<compile_context>
chip_gen: v7x
topology: tpu7x:2x2x1
jax: 0.10.0
libtpu: 0.0.40
codegen_flags: <defaults>
</compile_context>

<pallas_src>
import math

import numpy as np
import jax
import jax.numpy as jnp
from jax.experimental import pallas as pl
from jax.experimental.pallas import tpu as pltpu


def _make_kernel(compute_dtype):
    def kernel(tile_type_ref,          # scalar prefetch: (num_tiles,) i32 (SMEM)
               x_ref,                  # (M, F)   rows of a single atom type
               w0_ref, b0_ref,         # (1, F, H), (1, 1, H)
               w1_ref, b1_ref,         # (1, H, H), (1, 1, H)
               w2_ref, b2_ref,         # (1, H, H), (1, 1, H)
               w3_ref, b3_ref,         # (1, 1, H), (1, 1, 1)  (row-form final proj)
               out_ref):               # (1, 1, M) lane-dense per-row scalars
        del tile_type_ref              # consumed only by the BlockSpec index_maps
        x = x_ref[...].astype(compute_dtype)
        # layer 0: dense + tanh (f32 accumulation)
        h = jnp.tanh(jnp.dot(x, w0_ref[0],
                             preferred_element_type=jnp.float32) + b0_ref[0])
        # layers 1, 2: dense + tanh + residual (residual kept in f32)
        h = jnp.tanh(jnp.dot(h.astype(compute_dtype), w1_ref[0],
                             preferred_element_type=jnp.float32) + b1_ref[0]) + h
        h = jnp.tanh(jnp.dot(h.astype(compute_dtype), w2_ref[0],
                             preferred_element_type=jnp.float32) + b2_ref[0]) + h
        # final H -> 1 projection, lane-dense: (1,H) . (M,H)^T -> (1, M)
        out_row = jnp.einsum('oh,mh->om', w3_ref[0].astype(jnp.float32), h,
                             preferred_element_type=jnp.float32) + b3_ref[0]
        out_ref[0] = out_row.astype(out_ref.dtype)
    return kernel


def fitting_forward(x, channels, params, *, m_tile=256,
                    compute_dtype=jnp.float32):
    """x: (B, A, F) f32; channels: (A,) concrete int atom types;
    params: PyTorch layout [(W (n_types,out,in), b (n_types,out)) x 4 layers]
    with equal hidden widths.  Returns (B, A, 1) f32."""
    B, A, F = x.shape
    assert len(params) == 4, "Fitting default structure: 4 Dense layers"
    (w0, b0), (w1, b1), (w2, b2), (w3, b3) = params
    n_types, H = w0.shape[0], w0.shape[1]
    assert w1.shape[1:] == (H, H) and w2.shape[1:] == (H, H)
    assert w3.shape[1:] == (1, H)
    assert m_tile % 128 == 0

    # ---- host-side grouping: sort (atom, frame) rows by atom type; pad each
    # type's rows to a multiple of m_tile so every tile is single-type. ----
    ch = np.asarray(channels)
    src_chunks, tile_types = [], []
    dest_of_src = np.zeros(B * A, dtype=np.int32)
    dest_base = 0
    for t in range(n_types):
        atoms_t = np.nonzero(ch == t)[0]
        if atoms_t.size == 0:
            continue
        n_rows = int(atoms_t.size) * B
        n_tiles = -(-n_rows // m_tile)
        padded = n_tiles * m_tile
        # dest row (j*B + b) within this group  <-  src row (b*A + atoms_t[j])
        src = (np.arange(B)[None, :] * A + atoms_t[:, None]).reshape(-1)
        dest_of_src[src] = (dest_base + np.arange(n_rows)).astype(np.int32)
        src_chunks.append(np.concatenate(
            [src, np.zeros(padded - n_rows, dtype=src.dtype)]))
        tile_types.extend([t] * n_tiles)
        dest_base += padded
    src_rows = np.concatenate(src_chunks).astype(np.int32)
    tile_types = jnp.asarray(np.asarray(tile_types, dtype=np.int32))
    num_tiles = int(tile_types.shape[0])

    # One gather replaces the (B,A,F)->(A,B,F) transpose + per-atom grid.
    x_rows = jnp.take(x.reshape(B * A, F), jnp.asarray(src_rows), axis=0)

    cd = compute_dtype
    w0t = jnp.transpose(w0, (0, 2, 1)).astype(cd)      # (n_types, F, H)
    w1t = jnp.transpose(w1, (0, 2, 1)).astype(cd)      # (n_types, H, H)
    w2t = jnp.transpose(w2, (0, 2, 1)).astype(cd)      # (n_types, H, H)
    w3t = w3.astype(cd)                                # (n_types, 1, H) row form
    b0t = b0.reshape(n_types, 1, H).astype(jnp.float32)
    b1t = b1.reshape(n_types, 1, H).astype(jnp.float32)
    b2t = b2.reshape(n_types, 1, H).astype(jnp.float32)
    b3t = b3.reshape(n_types, 1, 1).astype(jnp.float32)

    def x_map(i, tt):
        return (i, 0)

    def typed_map(i, tt):
        return (tt[i], 0, 0)           # same block on consecutive same-type tiles -> DMA skipped

    grid_spec = pltpu.PrefetchScalarGridSpec(
        num_scalar_prefetch=1,
        grid=(num_tiles,),
        in_specs=[
            pl.BlockSpec((m_tile, F), x_map),
            pl.BlockSpec((1, F, H), typed_map), pl.BlockSpec((1, 1, H), typed_map),
            pl.BlockSpec((1, H, H), typed_map), pl.BlockSpec((1, 1, H), typed_map),
            pl.BlockSpec((1, H, H), typed_map), pl.BlockSpec((1, 1, H), typed_map),
            pl.BlockSpec((1, 1, H), typed_map), pl.BlockSpec((1, 1, 1), typed_map),
        ],
        out_specs=pl.BlockSpec((1, 1, m_tile), lambda i, tt: (i, 0, 0)),
    )

    out_tiles = pl.pallas_call(
        _make_kernel(cd),
        out_shape=jax.ShapeDtypeStruct((num_tiles, 1, m_tile), jnp.float32),
        grid_spec=grid_spec,
        compiler_params=pltpu.CompilerParams(
            dimension_semantics=("parallel",)),   # independent tiles: both TCs on v7x
    )(tile_types, x_rows, w0t, b0t, w1t, b1t, w2t, b2t, w3t, b3t)

    out_flat = out_tiles.reshape(num_tiles * m_tile)
    y = jnp.take(out_flat, jnp.asarray(dest_of_src), axis=0)  # (B*A,) batch-major
    return y.reshape(B, A, 1)


def init_params(key, n_types, in_features, neuron):
    """PyTorch-layout params: W (n_types, out, in), b (n_types, out);
    kaiming_uniform_(a=sqrt(5)) => bound 1/sqrt(fan_in) for both."""
    dims = [in_features] + list(neuron) + [1]
    params = []
    for i in range(len(dims) - 1):
        fan_in, fan_out = dims[i], dims[i + 1]
        bound = 1.0 / math.sqrt(fan_in)
        key, kw, kb = jax.random.split(key, 3)
        w = jax.random.uniform(kw, (n_types, fan_out, fan_in), jnp.float32,
                               -bound, bound)
        b = jax.random.uniform(kb, (n_types, fan_out), jnp.float32,
                               -bound, bound)
        params.append((w, b))
    return params


def reference_forward(x, channels, params):
    """Pure-JAX reference of the PyTorch forward (PyTorch weight layout)."""
    n_layers = len(params)
    h = x
    for i, (w, b) in enumerate(params):
        out = jnp.einsum('bai,aoi->bao', h, w[channels]) + b[channels][None]
        if i < n_layers - 1:
            out = jnp.tanh(out)
            if i > 0 and out.shape[-1] == h.shape[-1]:
                out = out + h
        h = out
    return h


if __name__ == "__main__":
    jax.config.update("jax_default_matmul_precision", "highest")

    n_types = 3
    in_features = 32
    neuron = [64, 64, 64]   # small stand-in for the default [240, 240, 240]
    B, A = 4, 16            # B frames, A atoms

    key = jax.random.PRNGKey(0)
    kx, kc, kp = jax.random.split(key, 3)

    x = jax.random.normal(kx, (B, A, in_features), jnp.float32)
    channels = jax.random.randint(kc, (A,), 0, n_types, jnp.int32)
    params = init_params(kp, n_types, in_features, neuron)

    ref = reference_forward(x, channels, params)

    # f32 path (strict check)
    out = fitting_forward(x, channels, params, m_tile=128,
                          compute_dtype=jnp.float32)
    out = jax.block_until_ready(out)
    assert out.shape == (B, A, 1)
    assert jnp.allclose(out, ref, rtol=1e-5, atol=1e-5), "f32 mismatch vs reference"

    # bf16 MXU path (f32 accumulation) -- looser tolerance
    out_bf16 = fitting_forward(x, channels, params, m_tile=128,
                               compute_dtype=jnp.bfloat16)
    out_bf16 = jax.block_until_ready(out_bf16)
    assert jnp.allclose(out_bf16, ref, rtol=5e-2, atol=5e-2), "bf16 mismatch vs reference"

    print("KERNEL_OK")
</pallas_src>

<mosaic_0001>
module attributes {stable_mosaic.version = 11 : i64} {
  func.func @kernel(%arg0: i32, %arg1: memref<3xi32, #tpu.memory_space<smem>>, %arg2: memref<128x32xf32, #tpu.memory_space<vmem>>, %arg3: memref<1x32x64xf32, #tpu.memory_space<vmem>>, %arg4: memref<1x1x64xf32, #tpu.memory_space<vmem>>, %arg5: memref<1x64x64xf32, #tpu.memory_space<vmem>>, %arg6: memref<1x1x64xf32, #tpu.memory_space<vmem>>, %arg7: memref<1x64x64xf32, #tpu.memory_space<vmem>>, %arg8: memref<1x1x64xf32, #tpu.memory_space<vmem>>, %arg9: memref<1x1x64xf32, #tpu.memory_space<vmem>>, %arg10: memref<1x1x1xf32, #tpu.memory_space<vmem>>, %arg11: memref<1x1x128xf32, #tpu.memory_space<vmem>>) attributes {dimension_semantics = [#tpu.dimension_semantics<parallel>], iteration_bounds = array<i64: 3>, scalar_prefetch = 1 : i64, scratch_operands = 0 : i64, tpu.core_type = #tpu.core_type<tc>, window_params = [{transform_indices = @transform_0, window_bounds = array<i64: 128, 32>}, {transform_indices = @transform_1, window_bounds = array<i64: 1, 32, 64>}, {transform_indices = @transform_2, window_bounds = array<i64: 1, 1, 64>}, {transform_indices = @transform_3, window_bounds = array<i64: 1, 64, 64>}, {transform_indices = @transform_4, window_bounds = array<i64: 1, 1, 64>}, {transform_indices = @transform_5, window_bounds = array<i64: 1, 64, 64>}, {transform_indices = @transform_6, window_bounds = array<i64: 1, 1, 64>}, {transform_indices = @transform_7, window_bounds = array<i64: 1, 1, 64>}, {transform_indices = @transform_8, window_bounds = array<i64: 1, 1, 1>}, {transform_indices = @transform_9, window_bounds = array<i64: 1, 1, 128>}]} {
    %c0 = arith.constant 0 : index
    %c0_0 = arith.constant 0 : index
    %0 = vector.load %arg2[%c0, %c0_0] : memref<128x32xf32, #tpu.memory_space<vmem>>, vector<128x32xf32>
    %c0_1 = arith.constant 0 : index
    %c0_2 = arith.constant 0 : index
    %c0_3 = arith.constant 0 : index
    %1 = vector.load %arg3[%c0_1, %c0_2, %c0_3] : memref<1x32x64xf32, #tpu.memory_space<vmem>>, vector<1x32x64xf32>
    %2 = vector.shape_cast %1 : vector<1x32x64xf32> to vector<32x64xf32>
    %cst = arith.constant dense<0.000000e+00> : vector<128x64xf32>
    %3 = tpu.matmul %0, %2, %cst {dimension_numbers = #tpu.dot_dimension_numbers<[1], [0], [0], [1], [0, 0, 1, 1], [], []>, precision = #tpu.contract_precision<fp32>} : vector<128x32xf32>, vector<32x64xf32>, vector<128x64xf32> -> vector<128x64xf32>
    %c0_4 = arith.constant 0 : index
    %c0_5 = arith.constant 0 : index
    %c0_6 = arith.constant 0 : index
    %4 = vector.load %arg4[%c0_4, %c0_5, %c0_6] : memref<1x1x64xf32, #tpu.memory_space<vmem>>, vector<1x1x64xf32>
    %5 = vector.shape_cast %4 : vector<1x1x64xf32> to vector<1x64xf32>
    %6 = vector.broadcast %5 : vector<1x64xf32> to vector<128x64xf32>
    %7 = arith.addf %3, %6 : vector<128x64xf32>
    %8 = math.tanh %7 : vector<128x64xf32>
    %c0_7 = arith.constant 0 : index
    %c0_8 = arith.constant 0 : index
    %c0_9 = arith.constant 0 : index
    %9 = vector.load %arg5[%c0_7, %c0_8, %c0_9] : memref<1x64x64xf32, #tpu.memory_space<vmem>>, vector<1x64x64xf32>
    %10 = vector.shape_cast %9 : vector<1x64x64xf32> to vector<64x64xf32>
    %cst_10 = arith.constant dense<0.000000e+00> : vector<128x64xf32>
    %11 = tpu.matmul %8, %10, %cst_10 {dimension_numbers = #tpu.dot_dimension_numbers<[1], [0], [0], [1], [0, 0, 1, 1], [], []>, precision = #tpu.contract_precision<fp32>} : vector<128x64xf32>, vector<64x64xf32>, vector<128x64xf32> -> vector<128x64xf32>
    %c0_11 = arith.constant 0 : index
    %c0_12 = arith.constant 0 : index
    %c0_13 = arith.constant 0 : index
    %12 = vector.load %arg6[%c0_11, %c0_12, %c0_13] : memref<1x1x64xf32, #tpu.memory_space<vmem>>, vector<1x1x64xf32>
    %13 = vector.shape_cast %12 : vector<1x1x64xf32> to vector<1x64xf32>
    %14 = vector.broadcast %13 : vector<1x64xf32> to vector<128x64xf32>
    %15 = arith.addf %11, %14 : vector<128x64xf32>
    %16 = math.tanh %15 : vector<128x64xf32>
    %17 = arith.addf %16, %8 : vector<128x64xf32>
    %c0_14 = arith.constant 0 : index
    %c0_15 = arith.constant 0 : index
    %c0_16 = arith.constant 0 : index
    %18 = vector.load %arg7[%c0_14, %c0_15, %c0_16] : memref<1x64x64xf32, #tpu.memory_space<vmem>>, vector<1x64x64xf32>
    %19 = vector.shape_cast %18 : vector<1x64x64xf32> to vector<64x64xf32>
    %cst_17 = arith.constant dense<0.000000e+00> : vector<128x64xf32>
    %20 = tpu.matmul %17, %19, %cst_17 {dimension_numbers = #tpu.dot_dimension_numbers<[1], [0], [0], [1], [0, 0, 1, 1], [], []>, precision = #tpu.contract_precision<fp32>} : vector<128x64xf32>, vector<64x64xf32>, vector<128x64xf32> -> vector<128x64xf32>
    %c0_18 = arith.constant 0 : index
    %c0_19 = arith.constant 0 : index
    %c0_20 = arith.constant 0 : index
    %21 = vector.load %arg8[%c0_18, %c0_19, %c0_20] : memref<1x1x64xf32, #tpu.memory_space<vmem>>, vector<1x1x64xf32>
    %22 = vector.shape_cast %21 : vector<1x1x64xf32> to vector<1x64xf32>
    %23 = vector.broadcast %22 : vector<1x64xf32> to vector<128x64xf32>
    %24 = arith.addf %20, %23 : vector<128x64xf32>
    %25 = math.tanh %24 : vector<128x64xf32>
    %26 = arith.addf %25, %17 : vector<128x64xf32>
    %c0_21 = arith.constant 0 : index
    %c0_22 = arith.constant 0 : index
    %c0_23 = arith.constant 0 : index
    %27 = vector.load %arg9[%c0_21, %c0_22, %c0_23] : memref<1x1x64xf32, #tpu.memory_space<vmem>>, vector<1x1x64xf32>
    %28 = vector.shape_cast %27 : vector<1x1x64xf32> to vector<1x64xf32>
    "tpu.trace_start"() <{level = 10 : i32, message = "oh,mh->om"}> : () -> ()
    %cst_24 = arith.constant dense<0.000000e+00> : vector<1x128xf32>
    %29 = tpu.matmul %28, %26, %cst_24 {dimension_numbers = #tpu.dot_dimension_numbers<[1], [1], [0], [0], [0, 0, 1, 0], [], []>, precision = #tpu.contract_precision<fp32>} : vector<1x64xf32>, vector<128x64xf32>, vector<1x128xf32> -> vector<1x128xf32>
    "tpu.trace_stop"() : () -> ()
    %c0_25 = arith.constant 0 : index
    %c0_26 = arith.constant 0 : index
    %c0_27 = arith.constant 0 : index
    %30 = vector.load %arg10[%c0_25, %c0_26, %c0_27] : memref<1x1x1xf32, #tpu.memory_space<vmem>>, vector<1x1x1xf32>
    %31 = vector.shape_cast %30 : vector<1x1x1xf32> to vector<1x1xf32>
    %32 = vector.broadcast %31 : vector<1x1xf32> to vector<1x128xf32>
    %33 = arith.addf %29, %32 : vector<1x128xf32>
    %c0_28 = arith.constant 0 : index
    %c0_29 = arith.constant 0 : index
    %c0_30 = arith.constant 0 : index
    %34 = vector.load %arg11[%c0_28, %c0_29, %c0_30] : memref<1x1x128xf32, #tpu.memory_space<vmem>>, vector<1x1x128xf32>
    %35 = vector.shape_cast %34 : vector<1x1x128xf32> to vector<1x128xf32>
    %36 = vector.shape_cast %33 : vector<1x128xf32> to vector<1x1x128xf32>
    tpu.vector_store %arg11[%c0_28, %c0_29, %c0_30], %36 {strides = array<i32>} : memref<1x1x128xf32, #tpu.memory_space<vmem>>, vector<1x1x128xf32>,
    return
  }
  func.func @transform_0(%arg0: i32, %arg1: memref<3xi32, #tpu.memory_space<smem>>) -> (i32, i32) {
    %c0_i32 = arith.constant 0 : i32
    %c0_i32_0 = arith.constant 0 : i32
    return %arg0, %c0_i32 : i32, i32
  }
  func.func @transform_1(%arg0: i32, %arg1: memref<3xi32, #tpu.memory_space<smem>>) -> (i32, i32, i32) {
    %0 = arith.index_cast %arg0 : i32 to index
    %1 = memref.load %arg1[%0] : memref<3xi32, #tpu.memory_space<smem>>
    %c0_i32 = arith.constant 0 : i32
    %c0_i32_0 = arith.constant 0 : i32
    %c0_i32_1 = arith.constant 0 : i32
    return %1, %c0_i32, %c0_i32_0 : i32, i32, i32
  }
  func.func @transform_2(%arg0: i32, %arg1: memref<3xi32, #tpu.memory_space<smem>>) -> (i32, i32, i32) {
    %0 = arith.index_cast %arg0 : i32 to index
    %1 = memref.load %arg1[%0] : memref<3xi32, #tpu.memory_space<smem>>
    %c0_i32 = arith.constant 0 : i32
    %c0_i32_0 = arith.constant 0 : i32
    %c0_i32_1 = arith.constant 0 : i32
    return %1, %c0_i32, %c0_i32_0 : i32, i32, i32
  }
  func.func @transform_3(%arg0: i32, %arg1: memref<3xi32, #tpu.memory_space<smem>>) -> (i32, i32, i32) {
    %0 = arith.index_cast %arg0 : i32 to index
    %1 = memref.load %arg1[%0] : memref<3xi32, #tpu.memory_space<smem>>
    %c0_i32 = arith.constant 0 : i32
    %c0_i32_0 = arith.constant 0 : i32
    %c0_i32_1 = arith.constant 0 : i32
    return %1, %c0_i32, %c0_i32_0 : i32, i32, i32
  }
  func.func @transform_4(%arg0: i32, %arg1: memref<3xi32, #tpu.memory_space<smem>>) -> (i32, i32, i32) {
    %0 = arith.index_cast %arg0 : i32 to index
    %1 = memref.load %arg1[%0] : memref<3xi32, #tpu.memory_space<smem>>
    %c0_i32 = arith.constant 0 : i32
    %c0_i32_0 = arith.constant 0 : i32
    %c0_i32_1 = arith.constant 0 : i32
    return %1, %c0_i32, %c0_i32_0 : i32, i32, i32
  }
  func.func @transform_5(%arg0: i32, %arg1: memref<3xi32, #tpu.memory_space<smem>>) -> (i32, i32, i32) {
    %0 = arith.index_cast %arg0 : i32 to index
    %1 = memref.load %arg1[%0] : memref<3xi32, #tpu.memory_space<smem>>
    %c0_i32 = arith.constant 0 : i32
    %c0_i32_0 = arith.constant 0 : i32
    %c0_i32_1 = arith.constant 0 : i32
    return %1, %c0_i32, %c0_i32_0 : i32, i32, i32
  }
  func.func @transform_6(%arg0: i32, %arg1: memref<3xi32, #tpu.memory_space<smem>>) -> (i32, i32, i32) {
    %0 = arith.index_cast %arg0 : i32 to index
    %1 = memref.load %arg1[%0] : memref<3xi32, #tpu.memory_space<smem>>
    %c0_i32 = arith.constant 0 : i32
    %c0_i32_0 = arith.constant 0 : i32
    %c0_i32_1 = arith.constant 0 : i32
    return %1, %c0_i32, %c0_i32_0 : i32, i32, i32
  }
  func.func @transform_7(%arg0: i32, %arg1: memref<3xi32, #tpu.memory_space<smem>>) -> (i32, i32, i32) {
    %0 = arith.index_cast %arg0 : i32 to index
    %1 = memref.load %arg1[%0] : memref<3xi32, #tpu.memory_space<smem>>
    %c0_i32 = arith.constant 0 : i32
    %c0_i32_0 = arith.constant 0 : i32
    %c0_i32_1 = arith.constant 0 : i32
    return %1, %c0_i32, %c0_i32_0 : i32, i32, i32
  }
  func.func @transform_8(%arg0: i32, %arg1: memref<3xi32, #tpu.memory_space<smem>>) -> (i32, i32, i32) {
    %0 = arith.index_cast %arg0 : i32 to index
    %1 = memref.load %arg1[%0] : memref<3xi32, #tpu.memory_space<smem>>
    %c0_i32 = arith.constant 0 : i32
    %c0_i32_0 = arith.constant 0 : i32
    %c0_i32_1 = arith.constant 0 : i32
    return %1, %c0_i32, %c0_i32_0 : i32, i32, i32
  }
  func.func @transform_9(%arg0: i32, %arg1: memref<3xi32, #tpu.memory_space<smem>>) -> (i32, i32, i32) {
    %c0_i32 = arith.constant 0 : i32
    %c0_i32_0 = arith.constant 0 : i32
    %c0_i32_1 = arith.constant 0 : i32
    return %arg0, %c0_i32, %c0_i32_0 : i32, i32, i32
  }
}

</mosaic_0001>

<bundles_post_ra>
// kernel: tpu_custom_call.1
= control target key start
LH: loop header
LB: loop body
LE: loop exit
PB: predicated region body
PF: predicated region fallthrough
CT: control target
= control target key end

     0   :  { %s9254_s0 = inlined_call_operand.hbm [shape: s32[3], index: 0, kind: input, shape index: {}]   ;;  %s9255_s1 = inlined_call_operand.vmem [shape: f32[384,32], index: 1, kind: input, shape index: {}]   ;;  %s9256_s2 = inlined_call_operand.vmem [shape: f32[3,32,64], index: 2, kind: input, shape index: {}]   ;;  %s9257_s3 = inlined_call_operand.vmem [shape: f32[3,1,64], index: 3, kind: input, shape index: {}]   ;;  %s9258_s4 = inlined_call_operand.vmem [shape: f32[3,64,64], index: 4, kind: input, shape index: {}]   ;;  %s9259_s5 = inlined_call_operand.vmem [shape: f32[3,1,64], index: 5, kind: input, shape index: {}]   ;;  %s9260_s6 = inlined_call_operand.vmem [shape: f32[3,64,64], index: 6, kind: input, shape index: {}]   ;;  %s9261_s7 = inlined_call_operand.vmem [shape: f32[3,1,64], index: 7, kind: input, shape index: {}]   ;;  %s9262_s8 = inlined_call_operand.vmem [shape: f32[3,1,64], index: 8, kind: input, shape index: {}]   ;;  %s9263_s9 = inlined_call_operand.vmem [shape: f32[3,1,1], index: 9, kind: input, shape index: {}]   ;;  %s9264_s10 = inlined_call_operand.hbm [shape: f32[3,1,128], index: 10, kind: output, shape index: {}]  }
   0x1   :  { %s7389_s15 = scalar_lea.hbm %s9254_s0, 16 }
   0x2   :  { %p7390_p0 = scmp.ne.s32.totalorder %s9254_s0, %s7389_s15  ;;  %p7393_p1 = scmp.lt.u32.totalorder %s7389_s15, %s9254_s0 }
   0x4   :  { %p7395_p2 = pnand %p7393_p1, %p7390_p0 }
   0x6   :  { %7398 = shalt.err (!%p7395_p2)  }
   0x7   :  { %s7465_s20 = smov [#allocation3]  }
   0x8   :  { %16 = dma.hbm_to_smem %s9254_s0, 16, %s7465_s20, [#allocation2] }
   0x9   :  { %7443 = dma.done.wait [#allocation2], 16 }
   0xa   :  { %7444 = vsyncadd [#allocation2], 4294967280 }
   0xb   :  { %18 = sfence }
   0xc   :  { %19 = vsyncpa [#allocation5], 0 }
   0xd   :  { %21 = vsyncpa [#allocation5 + $0x1], 0  ;;  %s7538_s23 = smov 0   ;;  %s7540_s24 = smov 0  }
   0xe   :  { %s7542_s25 = smov 0   ;;  %s7544_s26 = smov 0  }
   0xf LB: > { %s7559_s0 = sadd.s32 4294967295, %s7463_s26   ;;  %s5153_s27 = sadd.s32 4294967294, %s7463_s26   ;;  %s7463_s26 = sphi %s7544_s26, %s9417_s26   ;;  %s7459_s25 = sphi %s7542_s25, %s9416_s25   ;;  %s7455_s24 = sphi %s7540_s24, %s9415_s24   ;;  %s7451_s23 = sphi %s7538_s23, %s9414_s23  }
  0x10   : > { %s7563_s28 = sadd.s32 1, %s7463_s26   ;;  %s284_s29 = sadd.s32 1, %s7459_s25 }
  0x11   : > { %s281_s30 = ssub.s32 %s7463_s26, %s7563_s28  ;;  %p294_p3 = scmp.ne.s32.totalorder %s7459_s25, %s7455_s24 }
  0x12   : > { %p282_p4 = scmp.eq.s32.totalorder %s281_s30, 0  ;;  %p295_p5 = scmp.eq.s32.totalorder %s7559_s0, 2 }
  0x13   : > { %p300_p6 = scmp.ne.s32.totalorder %s7455_s24, %s7451_s23  ;;  %p301_p7 = scmp.eq.s32.totalorder %s5153_s27, 2 }
  0x14   : > { %s7574_s11 = scalar_select %p282_p4, %s7459_s25, %s284_s29  }
  0x15   : > { %p7576_p8 = por %p295_p5, %p294_p3  ;;  %p7580_p9 = por %p301_p7, %p300_p6 }
  0x16   : > { %p5156_p10 = scmp.ge.s32.totalorder %s7463_s26, 1  ;;  %p398_p11 = scmp.lt.s32.totalorder %s7463_s26, 4 }
  0x18   : > { %p399_p12 = pnand %p5156_p10, %p398_p11 }
  0x1a   : > { %402 = sbr.rel (%p399_p12) target bundleno = 1765 (0x6e5), region = 56 }
  0x21   : > { %s477_s14 = sld [smem:[#allocation3 + %s7559_s0]]  ;;  %s7588_s15 = sshll.u32 %s7559_s0, 4  ;;  %vm550_vm0 = vcmask 261120   ;;  %vm1760_vm1 = vcmask 523264   ;;  %vm7467_vm2 = vmmov 0  }
  0x22   : > { %p472_p13 = scmp.lt.s32.totalorder %s7588_s15, 47  ;;  %s489_s30 = sld [smem:[#allocation3 + %s7559_s0]] }
  0x23   : > { %s484_s19 = sld [smem:[#allocation3 + %s7559_s0]] }
  0x24   : > { %s473_s16 = scalar_select %p472_p13, %s7588_s15, 47 }
  0x25   : > { %s501_s27 = sld [smem:[#allocation3 + %s7559_s0]] }
  0x26   : > { %s5158_s17 = sshll.u32 %s473_s16, 3 }
  0x27   : > { %p478_p0 = scmp.lt.s32.totalorder %s477_s14, 2  ;;  %s7595_s20 = scalar_lea.vmem %s9255_s1, %s5158_s17 }
  0x28   : > { %v523_v0 = vld [vmem:[%s7595_s20] sm:$0xff]  ;;  %v524_v1 = vld [vmem:[%s7595_s20 + $0x8] sm:$0xff]  ;;  %v525_v2 = vld [vmem:[%s7595_s20 + $0x10] sm:$0xff]  ;;  %p490_p1 = scmp.lt.s32.totalorder %s489_s30, 2  ;;  %s496_s17 = sld [smem:[#allocation3 + %s7559_s0]] }
  0x29   : > { %s9419_s14 = smov (!%p478_p0, %s477_s14), 2  ;;  %v552_v3 = vsel %vm550_vm0, %v523_v0, 0  ;;  %v555_v4 = vsel %vm550_vm0, %v524_v1, 0  ;;  %v558_v5 = vsel %vm550_vm0, %v525_v2, 0  ;;  %v526_v6 = vld [vmem:[%s7595_s20 + $0x18] sm:$0xff]  ;;  %v527_v7 = vld [vmem:[%s7595_s20 + $0x20] sm:$0xff] }
  0x2a   : > { %v7605_v8 = vand.u32 4294901760, %v552_v3  ;;  %v7607_v9 = vand.u32 4294901760, %v555_v4  ;;  %v7609_v10 = vand.u32 4294901760, %v558_v5  ;;  %v561_v11 = vsel %vm550_vm0, %v526_v6, 0  ;;  %v528_v12 = vld [vmem:[%s7595_s20 + $0x28] sm:$0xff]  ;;  %v529_v13 = vld [vmem:[%s7595_s20 + $0x30] sm:$0xff] }
  0x2b   : > { %s5171_s21 = sshll.u32 %s9419_s14, 5  ;;  %v7614_v14 = vand.u32 4294901760, %v561_v11  ;;  %v564_v15 = vsel %vm550_vm0, %v527_v7, 0  ;;  %v567_v16 = vsel %vm550_vm0, %v528_v12, 0  ;;  %v570_v17 = vsel %vm550_vm0, %v529_v13, 0  ;;  %v530_v33 = vld [vmem:[%s7595_s20 + $0x38] sm:$0xff] }
  0x2c   : > { %s482_s29 = scalar_lea.vmem %s9256_s2, %s5171_s21  ;;  %v7623_v18 = vsub.f32 %v552_v3, %v7605_v8  ;;  %v7626_v19 = vsub.f32 %v555_v4, %v7607_v9  ;;  %v7629_v20 = vsub.f32 %v558_v5, %v7609_v10  ;;  %v7634_v25 = vand.u32 4294901760, %v564_v15  ;;  %v531_v50 = vld [vmem:[%s7595_s20 + $0x40] sm:$0xff]  ;;  %v532_v51 = vld [vmem:[%s7595_s20 + $0x48] sm:$0xff]  ;;  %v533_v7 = vld [vmem:[%s7595_s20 + $0x50] sm:$0xff]  ;;  %s9421_s30 = smov (!%p490_p1, %s489_s30), 2 }
  0x2d   : > { %v539_v21 = vld [vmem:[%s482_s29] sm:$0xff]  ;;  %v540_v22 = vld [vmem:[%s482_s29 + $0x8] sm:$0xff]  ;;  %v541_v23 = vld [vmem:[%s482_s29 + $0x10] sm:$0xff]  ;;  %v7632_v24 = vsub.f32 %v561_v11, %v7614_v14  ;;  %v7636_v26 = vand.u32 4294901760, %v567_v16  ;;  %v7638_v27 = vand.u32 4294901760, %v570_v17  ;;  %v573_v45 = vsel %vm550_vm0, %v530_v33, 0 }
  0x2e   : > { %v600_v28 = vand.u32 4294901760, %v539_v21  ;;  %v603_v29 = vand.u32 4294901760, %v540_v22  ;;  %v542_v30 = vld [vmem:[%s482_s29 + $0x18] sm:$0xff]  ;;  %v606_v31 = vand.u32 4294901760, %v541_v23  ;;  %v670_v32 = vand.u32 4294901760, %v7623_v18  ;;  %s5172_s14 = sshll.u32 %s9421_s30, 6 }
  0x2f   : > { %v609_v34 = vand.u32 4294901760, %v542_v30  ;;  %v680_v35 = vand.u32 4294901760, %v7626_v19  ;;  %v690_v36 = vand.u32 4294901760, %v7629_v20  ;;  %v700_v37 = vand.u32 4294901760, %v7632_v24  ;;  %s7928_s18 = scalar_lea.vmem %s9258_s4, %s5172_s14  ;;  %p485_p2 = scmp.lt.s32.totalorder %s484_s19, 2 }
  0x30   : > { %v7645_v38 = vpack.c.bf16 %v603_v29, %v600_v28  ;;  %v671_v39 = vsub.f32 %v7623_v18, %v670_v32  ;;  %v7650_v40 = vsub.f32 %v539_v21, %v600_v28  ;;  %v7652_v41 = vsub.f32 %v540_v22, %v603_v29  ;;  %v534_v22 = vld [vmem:[%s7595_s20 + $0x58] sm:$0xff]  ;;  %v535_v28 = vld [vmem:[%s7595_s20 + $0x60] sm:$0xff]  ;;  %p502_p3 = scmp.lt.s32.totalorder %s501_s27, 2  ;;  %p497_p4 = scmp.lt.s32.totalorder %s496_s17, 2 }
  0x31   : > { %v7654_v42 = vpack.c.bf16 %v609_v34, %v606_v31  ;;  %v681_v43 = vsub.f32 %v7626_v19, %v680_v35  ;;  %v691_v44 = vsub.f32 %v7629_v20, %v690_v36  ;;  %v7667_v49 = vsub.f32 %v564_v15, %v7634_v25  ;;  %s9423_s19 = smov (!%p485_p2, %s484_s19), 2  ;;  %s508_s21 = sld [smem:[#allocation3 + %s7559_s0]] }
  0x32   : > { %6567 = vmatprep.subr.bf16.mxu0 %v7645_v38  ;;  %v672_v46 = vand.u32 4294901760, %v671_v39  ;;  %v831_v47 = vand.u32 4294901760, %v7650_v40  ;;  %v838_v48 = vand.u32 4294901760, %v7652_v41  ;;  %v701_v53 = vsub.f32 %v7632_v24, %v700_v37  ;;  %s487_s22 = scalar_lea.vmem %s9257_s3, %s9423_s19  ;;  %s9425_s27 = smov (!%p502_p3, %s501_s27), 2 }
  0x33   : > { %6569 = vmatpush3.bf16.msra.mxu0 %v7645_v38  ;;  %v682_v52 = vand.u32 4294901760, %v681_v43  ;;  %v7676_v54 = vsub.f32 %v567_v16, %v7636_v26  ;;  %v710_v57 = vand.u32 4294901760, %v7667_v49  ;;  %v7687_v58 = vsub.f32 %v570_v17, %v7638_v27  ;;  %s5173_s29 = sshll.u32 %s9425_s27, 6  ;;  %s9427_s17 = smov (!%p497_p4, %s496_s17), 2 }
  0x34   : > { %6571 = vmatprep.subr.bf16.mxu0 %v7654_v42  ;;  %5692 = vmatprep.mubr.f32.mxu0 %v672_v46  ;;  %v832_v55 = vsub.f32 %v7650_v40, %v831_v47  ;;  %v839_v56 = vsub.f32 %v7652_v41, %v838_v48  ;;  %v7690_v60 = vand.u32 4294901760, %v573_v45  ;;  %v576_v61 = vsel %vm550_vm0, %v531_v50, 0  ;;  %s8364_s16 = scalar_lea.vmem %s9260_s6, %s5173_s29  ;;  %s513_s30 = sld [smem:[#allocation3 + %s7559_s0]] }
  0x35   : > { %v720_v59 = vand.u32 4294901760, %v7676_v54  ;;  %v579_v62 = vsel %vm550_vm0, %v532_v51, 0  ;;  %v692_v1 = vand.u32 4294901760, %v691_v44  ;;  %v711_v2 = vsub.f32 %v7667_v49, %v710_v57  ;;  %v536_v51 = vld [vmem:[%s7595_s20 + $0x68] sm:$0xff]  ;;  %s9212_s14 = scalar_lea.hbm %s9264_s10, %s7588_s15 }
  0x36   : > { %v833_v63 = vand.u32 4294901760, %v832_v55  ;;  %v840_v0 = vand.u32 4294901760, %v839_v56  ;;  %v730_v3 = vand.u32 4294901760, %v7687_v58  ;;  %v7700_v4 = vsub.f32 %v573_v45, %v7690_v60 }
  0x37   : > { %6573 = vmatpush3.bf16.msra.mxu0 %v7654_v42  ;;  %v7702_v5 = vand.u32 4294901760, %v576_v61  ;;  %v7704_v6 = vand.u32 4294901760, %v579_v62  ;;  %v702_v12 = vand.u32 4294901760, %v701_v53  ;;  %v7707_v13 = vsub.f32 %v541_v23, %v606_v31  ;;  %p509_p5 = scmp.lt.s32.totalorder %s508_s21, 2 }
  0x38   : > { %v6574_v11 = vpack.c.bf16 %v840_v0, %v833_v63  ;;  %v721_v15 = vsub.f32 %v7676_v54, %v720_v59  ;;  %v740_v16 = vand.u32 4294901760, %v7700_v4  ;;  %v712_v29 = vand.u32 4294901760, %v711_v2  ;;  %v538_v2 = vld [vmem:[%s7595_s20 + $0x78] sm:$0xff] }
  0x39   : > { %v7714_v17 = vsub.f32 %v576_v61, %v7702_v5  ;;  %v7717_v21 = vsub.f32 %v579_v62, %v7704_v6  ;;  %v845_v23 = vand.u32 4294901760, %v7707_v13  ;;  %v7722_v31 = vsub.f32 %v542_v30, %v609_v34  ;;  %s9429_s21 = smov (!%p509_p5, %s508_s21), 2 }
  0x3a   : > { %5693 = vmatmul.mubr.f32.vlgmr.msra.gmra.mrb[0].mxu0 %v682_v52  ;;  %6575 = vmatprep.subr.bf16.mxu0 %v6574_v11  ;;  %v582_v33 = vsel %vm550_vm0, %v533_v7, 0  ;;  %v731_v39 = vsub.f32 %v7687_v58, %v730_v3  ;;  %v741_v43 = vsub.f32 %v7700_v4, %v740_v16  ;;  %v585_v46 = vsel %vm550_vm0, %v534_v22, 0  ;;  %s511_s29 = scalar_lea.vmem %s9261_s7, %s9429_s21  ;;  %p514_p6 = scmp.lt.s32.totalorder %s513_s30, 2 }
  0x3b   : > { %6577 = vmatpush3.bf16.msra.mxu0 %v6574_v11  ;;  %5695 = vmatprep.mubr.f32.mxu0 %v692_v1  ;;  %v9265_v44 = vand.u32 4294901760, %v7714_v17  ;;  %v7732_v45 = vand.u32 4294901760, %v582_v33  ;;  %v846_v30 = vsub.f32 %v7707_v13, %v845_v23  ;;  %v852_v34 = vand.u32 4294901760, %v7722_v31  ;;  %v537_v1 = vld [vmem:[%s7595_s20 + $0x70] sm:$0xff]  ;;  %s499_s20 = scalar_lea.vmem %s9259_s5, %s9427_s17 }
  0x3c   : > { %v588_v50 = vsel %vm550_vm0, %v535_v28, 0  ;;  %v722_v52 = vand.u32 4294901760, %v721_v15  ;;  %v9266_v55 = vand.u32 4294901760, %v7717_v21  ;;  %v7747_v63 = vand.u32 4294901760, %v585_v46  ;;  %s9431_s30 = smov (!%p514_p6, %s513_s30), 2 }
  0x3d   : > { %v751_v53 = vsub.f32 %v7714_v17, %v9265_v44  ;;  %v7744_v56 = vsub.f32 %v582_v33, %v7732_v45  ;;  %v847_v61 = vand.u32 4294901760, %v846_v30  ;;  %v853_v62 = vsub.f32 %v7722_v31, %v852_v34  ;;  %s516_s17 = scalar_lea.vmem %s9262_s8, %s9431_s30 }
  0x3e   : > { %5696 = vmatmul.mubr.f32.gmra.mrb[2].mxu0 %v702_v12  ;;  %v7749_v0 = vand.u32 4294901760, %v588_v50  ;;  %v732_v7 = vand.u32 4294901760, %v731_v39  ;;  %v742_v11 = vand.u32 4294901760, %v741_v43  ;;  %v591_v22 = vsel %vm550_vm0, %v536_v51, 0 }
  0x3f   : > { %5698 = vmatprep.mubr.f32.mxu0 %v712_v29  ;;  %v9267_v15 = vand.u32 4294901760, %v7744_v56  ;;  %v854_v28 = vand.u32 4294901760, %v853_v62  ;;  %v7756_v33 = vsub.f32 %v585_v46, %v7747_v63  ;;  %v7761_v30 = vand.u32 4294901760, %v591_v22 }
  0x40   : > { %v7759_v12 = vsub.f32 %v588_v50, %v7749_v0  ;;  %v752_v44 = vand.u32 4294901760, %v751_v53  ;;  %v761_v29 = vsub.f32 %v7717_v21, %v9266_v55  ;;  %v594_v39 = vsel %vm550_vm0, %v537_v1, 0 }
  0x41   : > { %v597_v43 = vsel %vm550_vm0, %v538_v2, 0  ;;  %v6578_v51 = vpack.c.bf16 %v854_v28, %v847_v61  ;;  %v780_v62 = vand.u32 4294901760, %v7756_v33  ;;  %v7770_v46 = vsub.f32 %v591_v22, %v7761_v30 }
  0x42   : > { %5699 = vmatmul.mubr.f32.gmra.mrb[4].mxu0 %v722_v52  ;;  %v6582_v50 = vpack.c.bf16 %v7652_v41, %v7650_v40  ;;  %v771_v53 = vsub.f32 %v7744_v56, %v9267_v15  ;;  %v790_v55 = vand.u32 4294901760, %v7759_v12  ;;  %v7778_v1 = vand.u32 4294901760, %v594_v39 }
  0x43   : > { %5701 = vmatprep.mubr.f32.mxu0 %v732_v7  ;;  %v7780_v2 = vand.u32 4294901760, %v597_v43  ;;  %6579 = vmatprep.subr.bf16.mxu0 %v6578_v51  ;;  %v7786_v52 = vpack.c.bf16 %v838_v48, %v831_v47  ;;  %v7791_v7 = vpack.c.bf16 %v852_v34, %v845_v23  ;;  %v762_v22 = vand.u32 4294901760, %v761_v29 }
  0x44   : > { %6581 = vmatpush3.bf16.msra.mxu0 %v6578_v51  ;;  %v7789_v61 = vsub.f32 %v594_v39, %v7778_v1  ;;  %v781_v28 = vsub.f32 %v7756_v33, %v780_v62  ;;  %v800_v15 = vand.u32 4294901760, %v7770_v46  ;;  %v772_v41 = vand.u32 4294901760, %v771_v53 }
  0x45   : > { %v7798_v40 = vsub.f32 %v597_v43, %v7780_v2  ;;  %6583 = vmatprep.subr.bf16.mxu0 %v6582_v50  ;;  %v791_v47 = vsub.f32 %v7759_v12, %v790_v55 }
  0x46   : > { %5702 = vmatmul.mubr.f32.gmra.mrb[6].mxu0 %v742_v11  ;;  %v810_v48 = vand.u32 4294901760, %v7789_v61  ;;  %v782_v23 = vand.u32 4294901760, %v781_v28  ;;  %v801_v34 = vsub.f32 %v7770_v46, %v800_v15 }
  0x47   : > { %5704 = vmatprep.mubr.f32.mxu0 %v752_v44  ;;  %v820_v11 = vand.u32 4294901760, %v7798_v40  ;;  %v792_v29 = vand.u32 4294901760, %v791_v47 }
  0x48   : > { %v811_v44 = vsub.f32 %v7789_v61, %v810_v48  ;;  %v802_v39 = vand.u32 4294901760, %v801_v34 }
  0x49   : > { %v821_v43 = vsub.f32 %v7798_v40, %v820_v11 }
  0x4a   : > { %5705 = vmatmul.mubr.f32.gmra.mrb[8].mxu0 %v762_v22  ;;  %v812_v51 = vand.u32 4294901760, %v811_v44  ;;  %v6586_v22 = vpack.c.bf16 %v7722_v31, %v7707_v13 }
  0x4b   : > { %5707 = vmatprep.mubr.f32.mxu0 %v772_v41  ;;  %v822_v53 = vand.u32 4294901760, %v821_v43 }
  0x4e   : > { %5708 = vmatmul.mubr.f32.gmra.mrb[10].mxu0 %v782_v23 }
  0x4f   : > { %5710 = vmatprep.mubr.f32.mxu0 %v792_v29 }
  0x52   : > { %5711 = vmatmul.mubr.f32.gmra.mrb[12].mxu0 %v802_v39 }
  0x53   : > { %5713 = vmatprep.mubr.f32.mxu0 %v812_v51 }
  0x56   : > { %5714 = vmatmul.mubr.f32.gmra.mrb[14].mxu0 %v822_v53 }
  0x57   : > { %5724 = vmatprep.mubr.f32.mxu0 %v7605_v8 }
  0x5a   : > { %5725 = vmatmul.mubr.f32.vlgmr.msra.gmra.mrb[0].mxu0 %v7607_v9 }
  0x5b   : > { %6585 = vmatpush3.bf16.msra.mxu0 %v6582_v50  ;;  %5727 = vmatprep.mubr.f32.mxu0 %v7609_v10 }
  0x5c   : > { %6587 = vmatprep.subr.bf16.mxu0 %v6586_v22 }
  0x5e   : > { %5728 = vmatmul.mubr.f32.gmra.mrb[2].mxu0 %v7614_v14 }
  0x5f   : > { %5730 = vmatprep.mubr.f32.mxu0 %v7634_v25  ;;  %6589 = vmatpush3.bf16.msra.mxu0 %v6586_v22  ;;  %v8020_v22 = vld [vmem:[%s487_s22] ss:$0 sm:$0xff] }
  0x60   : > { %6591 = vmatprep.subr.bf16.mxu0 %v7645_v38 }
  0x62   : > { %5731 = vmatmul.mubr.f32.gmra.mrb[4].mxu0 %v7636_v26 }
  0x63   : > { %5733 = vmatprep.mubr.f32.mxu0 %v7638_v27 }
  0x66   : > { %5734 = vmatmul.mubr.f32.gmra.mrb[6].mxu0 %v7690_v60 }
  0x67   : > { %5736 = vmatprep.mubr.f32.mxu0 %v7702_v5 }
  0x6a   : > { %5737 = vmatmul.mubr.f32.gmra.mrb[8].mxu0 %v7704_v6 }
  0x6b   : > { %5739 = vmatprep.mubr.f32.mxu0 %v7732_v45 }
  0x6e   : > { %5740 = vmatmul.mubr.f32.gmra.mrb[10].mxu0 %v7747_v63 }
  0x6f   : > { %5742 = vmatprep.mubr.f32.mxu0 %v7749_v0 }
  0x72   : > { %5743 = vmatmul.mubr.f32.gmra.mrb[12].mxu0 %v7761_v30 }
  0x73   : > { %5745 = vmatprep.mubr.f32.mxu0 %v7778_v1 }
  0x76   : > { %5746 = vmatmul.mubr.f32.gmra.mrb[14].mxu0 %v7780_v2 }
  0x77   : > { %5756 = vmatprep.mubr.f32.mxu0 %v7623_v18  ;;  %v9331_v18 = vand.u32 4294901760, %v7714_v17 }
  0x7a   : > { %5757 = vmatmul.mubr.f32.vlgmr.msra.gmra.mrb[0].mxu0 %v7626_v19  ;;  %v9332_v19 = vand.u32 4294901760, %v7717_v21 }
  0x7b   : > { %6593 = vmatpush3.bf16.msra.mxu0 %v7645_v38  ;;  %5759 = vmatprep.mubr.f32.mxu0 %v7629_v20  ;;  %v9333_v20 = vand.u32 4294901760, %v7744_v56 }
  0x7c   : > { %6595 = vmatprep.subr.bf16.mxu0 %v7654_v42 }
  0x7e   : > { %5760 = vmatmul.mubr.f32.gmra.mrb[2].mxu0 %v7632_v24 }
  0x7f   : > { %5762 = vmatprep.mubr.f32.mxu0 %v7667_v49  ;;  %6597 = vmatpush3.bf16.msra.mxu0 %v7654_v42 }
  0x80   : > { %6599 = vmatprep.subr.bf16.mxu0 %v7786_v52 }
  0x82   : > { %5763 = vmatmul.mubr.f32.gmra.mrb[4].mxu0 %v7676_v54 }
  0x83   : > { %5765 = vmatprep.mubr.f32.mxu0 %v7687_v58  ;;  %v1750_v58 = vld [vmem:[%s7928_s18 + $0x28] sm:$0xff] }
  0x86   : > { %5766 = vmatmul.mubr.f32.gmra.mrb[6].mxu0 %v7700_v4 }
  0x87   : > { %5768 = vmatprep.mubr.f32.mxu0 %v7714_v17 }
  0x8a   : > { %5769 = vmatmul.mubr.f32.gmra.mrb[8].mxu0 %v7717_v21 }
  0x8b   : > { %5771 = vmatprep.mubr.f32.mxu0 %v7744_v56 }
  0x8e   : > { %5772 = vmatmul.mubr.f32.gmra.mrb[10].mxu0 %v7756_v33 }
  0x8f   : > { %5774 = vmatprep.mubr.f32.mxu0 %v7759_v12 }
  0x92   : > { %5775 = vmatmul.mubr.f32.gmra.mrb[12].mxu0 %v7770_v46 }
  0x93   : > { %5777 = vmatprep.mubr.f32.mxu0 %v7789_v61 }
  0x96   : > { %5778 = vmatmul.mubr.f32.gmra.mrb[14].mxu0 %v7798_v40 }
  0x97   : > { %5788 = vmatprep.mubr.f32.mxu0 %v670_v32 }
  0x9a   : > { %5789 = vmatmul.mubr.f32.vlgmr.msra.gmra.mrb[0].mxu0 %v680_v35 }
  0x9b   : > { %6601 = vmatpush3.bf16.msra.mxu0 %v7786_v52  ;;  %5791 = vmatprep.mubr.f32.mxu0 %v690_v36 }
  0x9c   : > { %6603 = vmatprep.subr.bf16.mxu0 %v7791_v7 }
  0x9e   : > { %5792 = vmatmul.mubr.f32.gmra.mrb[2].mxu0 %v700_v37 }
  0x9f   : > { %5794 = vmatprep.mubr.f32.mxu0 %v710_v57  ;;  %6605 = vmatpush3.bf16.msra.mxu0 %v7791_v7  ;;  %v1749_v57 = vld [vmem:[%s7928_s18 + $0x20] sm:$0xff] }
  0xa0   : > { %6607 = vmatprep.subr.bf16.mxu0 %v7645_v38 }
  0xa2   : > { %5795 = vmatmul.mubr.f32.gmra.mrb[4].mxu0 %v720_v59 }
  0xa3   : > { %5797 = vmatprep.mubr.f32.mxu0 %v730_v3 }
  0xa6   : > { %5798 = vmatmul.mubr.f32.gmra.mrb[6].mxu0 %v740_v16 }
  0xa7   : > { %5800 = vmatprep.mubr.f32.mxu0 %v9331_v18 }
  0xaa   : > { %5801 = vmatmul.mubr.f32.gmra.mrb[8].mxu0 %v9332_v19 }
  0xab   : > { %5803 = vmatprep.mubr.f32.mxu0 %v9333_v20 }
  0xae   : > { %5804 = vmatmul.mubr.f32.gmra.mrb[10].mxu0 %v780_v62 }
  0xaf   : > { %5806 = vmatprep.mubr.f32.mxu0 %v790_v55  ;;  %v1752_v55 = vld [vmem:[%s7928_s18 + $0x38] sm:$0xff] }
  0xb2   : > { %5807 = vmatmul.mubr.f32.gmra.mrb[12].mxu0 %v800_v15  ;;  %v1831_v15 = vand.u32 4294901760, %v1752_v55 }
  0xb3   : > { %5809 = vmatprep.mubr.f32.mxu0 %v810_v48 }
  0xb4   : > { %v7972_v50 = vsub.f32 %v1752_v55, %v1831_v15 }
  0xb6   : > { %5810 = vmatmul.mubr.f32.gmra.mrb[14].mxu0 %v820_v11  ;;  %v9268_v61 = vand.u32 4294901760, %v7972_v50 }
  0xb7   : > { %5820 = vmatprep.mubr.f32.mxu0 %v7605_v8 }
  0xb8   : > { %v2095_v47 = vsub.f32 %v7972_v50, %v9268_v61 }
  0xba   : > { %5821 = vmatmul.mubr.f32.vlgmr.msra.gmra.mrb[0].mxu0 %v7607_v9  ;;  %v2096_v34 = vand.u32 4294901760, %v2095_v47 }
  0xbb   : > { %6609 = vmatpush3.bf16.msra.mxu0 %v7645_v38  ;;  %5823 = vmatprep.mubr.f32.mxu0 %v7609_v10 }
  0xbc   : > { %6611 = vmatprep.subr.bf16.mxu0 %v7654_v42 }
  0xbe   : > { %5824 = vmatmul.mubr.f32.gmra.mrb[2].mxu0 %v7614_v14 }
  0xbf   : > { %5826 = vmatprep.mubr.f32.mxu0 %v7634_v25  ;;  %6613 = vmatpush3.bf16.msra.mxu0 %v7654_v42 }
  0xc2   : > { %5827 = vmatmul.mubr.f32.gmra.mrb[4].mxu0 %v7636_v26 }
  0xc3   : > { %5829 = vmatprep.mubr.f32.mxu0 %v7638_v27 }
  0xc6   : > { %5830 = vmatmul.mubr.f32.gmra.mrb[6].mxu0 %v7690_v60 }
  0xc7   : > { %5832 = vmatprep.mubr.f32.mxu0 %v7702_v5 }
  0xca   : > { %5833 = vmatmul.mubr.f32.gmra.mrb[8].mxu0 %v7704_v6 }
  0xcb   : > { %5835 = vmatprep.mubr.f32.mxu0 %v7732_v45 }
  0xce   : > { %5836 = vmatmul.mubr.f32.gmra.mrb[10].mxu0 %v7747_v63 }
  0xcf   : > { %5838 = vmatprep.mubr.f32.mxu0 %v7749_v0 }
  0xd2   : > { %5839 = vmatmul.mubr.f32.gmra.mrb[12].mxu0 %v7761_v30 }
  0xd3   : > { %5841 = vmatprep.mubr.f32.mxu0 %v7778_v1 }
  0xd6   : > { %5842 = vmatmul.mubr.f32.gmra.mrb[14].mxu0 %v7780_v2 }
  0xd7   : > { %5852 = vmatprep.mubr.f32.mxu0 %v7605_v8  ;;  %v1745_v8 = vld [vmem:[%s7928_s18] sm:$0xff] }
  0xda   : > { %5853 = vmatmul.mubr.f32.vlgmr.msra.gmra.mrb[0].mxu0 %v7607_v9  ;;  %v1746_v9 = vld [vmem:[%s7928_s18 + $0x8] sm:$0xff] }
  0xdb   : > { %5855 = vmatprep.mubr.f32.mxu0 %v7609_v10  ;;  %v1810_v10 = vand.u32 4294901760, %v1745_v8 }
  0xdd   : > { %v7932_v24 = vsub.f32 %v1745_v8, %v1810_v10 }
  0xde   : > { %5856 = vmatmul.mubr.f32.gmra.mrb[2].mxu0 %v7614_v14  ;;  %v1813_v14 = vand.u32 4294901760, %v1746_v9 }
  0xdf   : > { %5858 = vmatprep.mubr.f32.mxu0 %v7634_v25  ;;  %v9285_v32 = vand.u32 4294901760, %v7932_v24 }
  0xe0   : > { %v7934_v25 = vsub.f32 %v1746_v9, %v1813_v14  ;;  %v7966_v33 = vpack.c.bf16 %v1813_v14, %v1810_v10 }
  0xe1   : > { %v2046_v38 = vsub.f32 %v7932_v24, %v9285_v32 }
  0xe2   : > { %5859 = vmatmul.mubr.f32.gmra.mrb[4].mxu0 %v7636_v26  ;;  %v1747_v26 = vld [vmem:[%s7928_s18 + $0x10] sm:$0xff]  ;;  %v9284_v35 = vand.u32 4294901760, %v7934_v25  ;;  %6615 = vmatprep.subr.bf16.mxu0 %v7966_v33  ;;  %v6646_v39 = vpack.c.bf16 %v7934_v25, %v7932_v24 }
  0xe3   : > { %5861 = vmatprep.mubr.f32.mxu0 %v7638_v27  ;;  %v1748_v27 = vld [vmem:[%s7928_s18 + $0x18] sm:$0xff]  ;;  %v1816_v36 = vand.u32 4294901760, %v1747_v26  ;;  %v2047_v59 = vand.u32 4294901760, %v2046_v38  ;;  %6617 = vmatpush3.bf16.msra.mxu0 %v7966_v33 }
  0xe4   : > { %v1819_v37 = vand.u32 4294901760, %v1748_v27  ;;  %v2053_v42 = vsub.f32 %v7934_v25, %v9284_v35 }
  0xe5   : > { %v7946_v49 = vsub.f32 %v1747_v26, %v1816_v36 }
  0xe6   : > { %5862 = vmatmul.mubr.f32.gmra.mrb[6].mxu0 %v7690_v60  ;;  %v7948_v54 = vsub.f32 %v1748_v27, %v1819_v37  ;;  %v2054_v60 = vand.u32 4294901760, %v2053_v42  ;;  %v7984_v7 = vpack.c.bf16 %v1819_v37, %v1816_v36 }
  0xe7   : > { %5864 = vmatprep.mubr.f32.mxu0 %v7702_v5  ;;  %v9281_v3 = vand.u32 4294901760, %v7946_v49  ;;  %v1822_v5 = vand.u32 4294901760, %v1749_v57 }
  0xe8   : > { %v9280_v4 = vand.u32 4294901760, %v7948_v54  ;;  %v6630_v13 = vpack.c.bf16 %v2054_v60, %v2047_v59  ;;  %6619 = vmatprep.subr.bf16.mxu0 %v7984_v7  ;;  %v8006_v43 = vpack.c.bf16 %v7948_v54, %v7946_v49 }
  0xe9   : > { %v2060_v16 = vsub.f32 %v7946_v49, %v9281_v3  ;;  %v7960_v21 = vsub.f32 %v1749_v57, %v1822_v5  ;;  %6621 = vmatpush3.bf16.msra.mxu0 %v7984_v7 }
  0xea   : > { %5865 = vmatmul.mubr.f32.gmra.mrb[8].mxu0 %v7704_v6  ;;  %v1825_v6 = vand.u32 4294901760, %v1750_v58  ;;  %v2067_v17 = vsub.f32 %v7948_v54, %v9280_v4  ;;  %6631 = vmatprep.subr.bf16.mxu1 %v6630_v13 }
  0xeb   : > { %5867 = vmatprep.mubr.f32.mxu0 %v7732_v45  ;;  %v1751_v45 = vld [vmem:[%s7928_s18 + $0x30] sm:$0xff]  ;;  %v2061_v56 = vand.u32 4294901760, %v2060_v16  ;;  %6633 = vmatpush3.bf16.msra.mxu1 %v6630_v13  ;;  %v9275_v12 = vand.u32 4294901760, %v7960_v21  ;;  %s518_s18 = sld [smem:[#allocation3 + %s7559_s0]]  ;;  %s469_s0 = sand.u32 1, %s7455_s24  }
  0xec   : > { %v7962_v31 = vsub.f32 %v1750_v58, %v1825_v6  ;;  %v7994_v11 = vpack.c.bf16 %v1825_v6, %v1822_v5  ;;  %s470_s22 = scalar_lea.vmem [#allocation4], %s469_s0 }
  0xed   : > { %s5017_s27 = sshll.u32 %s470_s22, 4  ;;  %s9214_s27 = int_to_ptr.vmem [resolvable:$true] %s5017_s27 }
  0xee   : > { %5868 = vmatmul.mubr.f32.gmra.mrb[10].mxu0 %v7747_v63  ;;  %v2068_v63 = vand.u32 4294901760, %v2067_v17  ;;  %6623 = vmatprep.subr.bf16.mxu0 %v7994_v11  ;;  %v8010_v51 = vpack.c.bf16 %v7962_v31, %v7960_v21 }
  0xef   : > { %5870 = vmatprep.mubr.f32.mxu0 %v7749_v0  ;;  %v1828_v0 = vand.u32 4294901760, %v1751_v45  ;;  %6625 = vmatpush3.bf16.msra.mxu0 %v7994_v11 }
  0xf0   : > { %v6634_v62 = vpack.c.bf16 %v2068_v63, %v2061_v56 }
  0xf1   : > { %v7970_v46 = vsub.f32 %v1751_v45, %v1828_v0  ;;  %v7998_v44 = vpack.c.bf16 %v1831_v15, %v1828_v0  ;;  %p519_p7 = scmp.lt.s32.totalorder %s518_s18, 2 }
  0xf2   : > { %5871 = vmatmul.mubr.f32.gmra.mrb[12].mxu0 %v7761_v30  ;;  %v9274_v30 = vand.u32 4294901760, %v7962_v31  ;;  %6635 = vmatprep.subr.bf16.mxu1 %v6634_v62 }
  0xf3   : > { %5873 = vmatprep.mubr.f32.mxu0 %v7778_v1  ;;  %v2074_v1 = vsub.f32 %v7960_v21, %v9275_v12  ;;  %v9269_v52 = vand.u32 4294901760, %v7970_v46  ;;  %6637 = vmatpush3.bf16.msra.mxu1 %v6634_v62  ;;  %v8014_v53 = vpack.c.bf16 %v7972_v50, %v7970_v46  ;;  %s9433_s18 = smov (!%p519_p7, %s518_s18), 2 }
  0xf4   : > { %6627 = vmatprep.subr.bf16.mxu0 %v7998_v44  ;;  %s521_s21 = scalar_lea.vmem %s9263_s9, %s9433_s18  ;;  %s7470_s18 = smov [#allocation4]  }
  0xf5   : > { %v2075_v28 = vand.u32 4294901760, %v2074_v1  ;;  %v2088_v41 = vsub.f32 %v7970_v46, %v9269_v52  ;;  %6629 = vmatpush3.bf16.msra.mxu0 %v7998_v44  ;;  %s7403_s19 = sshll.u32 %s7470_s18, 4  ;;  %s7404_s19 = int_to_ptr.vmem [resolvable:$false] %s7403_s19 }
  0xf6   : > { %5874 = vmatmul.mubr.f32.gmra.mrb[14].mxu0 %v7780_v2  ;;  %v2081_v2 = vsub.f32 %v7962_v31, %v9274_v30  ;;  %p7406_p13 = scmp.lt.s32.totalorder %s9214_s27, %s7404_s19 }
  0xf7   : > { %v2089_v23 = vand.u32 4294901760, %v2088_v41 }
  0xf8   : > { %v2082_v40 = vand.u32 4294901760, %v2081_v2 }
  0xf9   : > { %v6642_v29 = vpack.c.bf16 %v2096_v34, %v2089_v23 }
  0xfa   : > { %v6638_v48 = vpack.c.bf16 %v2082_v40, %v2075_v28 }
  0xfc   : > { %6639 = vmatprep.subr.bf16.mxu1 %v6638_v48 }
  0xfd   : > { %6641 = vmatpush3.bf16.msra.mxu1 %v6638_v48 }
  0xfe   : > { %6643 = vmatprep.subr.bf16.mxu1 %v6642_v29 }
 0x101   : > { %6645 = vmatpush3.bf16.msra.mxu1 %v6642_v29 }
 0x102   : > { %6647 = vmatprep.subr.bf16.mxu1 %v6646_v39 }
 0x1ad   : > { %v5854_v18 = vpop.f32.mrb[0].mxu0 }
 0x1ae   : > { %v6950_v19 = vadd.f32 %v5854_v18, %v8020_v22  ;;  %v1635_v20 = vpop.f32.mrb[1].mxu0 }
 0x1af   : > { %v6951_v8 = vadd.f32 %v8020_v22, %v1635_v20 }
 0x1b0   : > { %7293 = vtanh.f32 %v6950_v19 }
 0x1b1   : > { %7295 = vtanh.f32 %v6951_v8  ;;  %v5857_v9 = vpop.f32.mrb[2].mxu0 }
 0x1b2   : > { %v6952_v10 = vadd.f32 %v5857_v9, %v8020_v22  ;;  %v1647_v14 = vpop.f32.mrb[3].mxu0 }
 0x1b3   : > { %v6953_v26 = vadd.f32 %v8020_v22, %v1647_v14 }
 0x1b4   : > { %7297 = vtanh.f32 %v6952_v10 }
 0x1b5   : > { %7299 = vtanh.f32 %v6953_v26  ;;  %v5860_v27 = vpop.f32.mrb[4].mxu0 }
 0x1b6   : > { %v6954_v36 = vadd.f32 %v5860_v27, %v8020_v22  ;;  %v1659_v37 = vpop.f32.mrb[5].mxu0 }
 0x1b7   : > { %v6955_v38 = vadd.f32 %v8020_v22, %v1659_v37 }
 0x1b8   : > { %7301 = vtanh.f32 %v6954_v36 }
 0x1b9   : > { %7303 = vtanh.f32 %v6955_v38  ;;  %v5863_v42 = vpop.f32.mrb[6].mxu0 }
 0x1ba   : > { %v8028_v57 = vpop.eup %7293  ;;  %v6956_v58 = vadd.f32 %v5863_v42, %v8020_v22  ;;  %v1671_v59 = vpop.f32.mrb[7].mxu0 }
 0x1bb   : > { %v8031_v60 = vpop.eup %7295  ;;  %v6957_v5 = vadd.f32 %v8020_v22, %v1671_v59  ;;  %v1765_v6 = vsel %vm1760_vm1, %v8028_v57, 0 }
 0x1bc   : > { %7305 = vtanh.f32 %v6956_v58  ;;  %v1762_v13 = vsel %vm1760_vm1, %v8031_v60, 0  ;;  %v8038_v16 = vand.u32 4294901760, %v1765_v6 }
 0x1bd   : > { %7307 = vtanh.f32 %v6957_v5  ;;  %v5866_v17 = vpop.f32.mrb[8].mxu0  ;;  %v8040_v45 = vand.u32 4294901760, %v1762_v13 }
 0x1be   : > { %v8042_v55 = vpop.eup %7297  ;;  %v6958_v56 = vadd.f32 %v5866_v17, %v8020_v22  ;;  %v1683_v63 = vpop.f32.mrb[9].mxu0  ;;  %v8046_v0 = vsub.f32 %v1765_v6, %v8038_v16 }
 0x1bf   : > { %v8048_v15 = vpop.eup %7299  ;;  %v6959_v62 = vadd.f32 %v8020_v22, %v1683_v63  ;;  %5932 = vmatprep.mubr.f32.mxu1 %v8040_v45  ;;  %v1771_v1 = vsel %vm1760_vm1, %v8042_v55, 0  ;;  %v8055_v2 = vsub.f32 %v1762_v13, %v8040_v45 }
 0x1c0   : > { %7309 = vtanh.f32 %v6958_v56  ;;  %v9278_v28 = vand.u32 4294901760, %v8046_v0  ;;  %5933 = vmatmul.mubr.f32.vlgmr.msra.gmra.mrb[0].mxu1 %v8038_v16  ;;  %v1768_v40 = vsel %vm1760_vm1, %v8048_v15, 0  ;;  %v8061_v41 = vand.u32 4294901760, %v1771_v1 }
 0x1c1   : > { %7311 = vtanh.f32 %v6959_v62  ;;  %v5869_v47 = vpop.f32.mrb[10].mxu0  ;;  %6649 = vmatpush3.bf16.msra.mxu1 %v6646_v39  ;;  %v8063_v48 = vand.u32 4294901760, %v1768_v40  ;;  %v9283_v23 = vand.u32 4294901760, %v8055_v2 }
 0x1c2   : > { %v8066_v34 = vpop.eup %7301  ;;  %v6960_v29 = vadd.f32 %v5869_v47, %v8020_v22  ;;  %v1695_v18 = vpop.f32.mrb[11].mxu0  ;;  %v1895_v19 = vsub.f32 %v8046_v0, %v9278_v28  ;;  %6651 = vmatprep.subr.bf16.mxu1 %v8006_v43  ;;  %v8074_v20 = vsub.f32 %v1771_v1, %v8061_v41 }
 0x1c3   : > { %v8076_v8 = vpop.eup %7303  ;;  %v6961_v39 = vadd.f32 %v8020_v22, %v1695_v18  ;;  %5935 = vmatprep.mubr.f32.mxu1 %v8063_v48  ;;  %v1885_v9 = vsub.f32 %v8055_v2, %v9283_v23  ;;  %v1777_v10 = vsel %vm1760_vm1, %v8066_v34, 0  ;;  %v8086_v14 = vsub.f32 %v1768_v40, %v8063_v48 }
 0x1c4   : > { %7313 = vtanh.f32 %v6960_v29  ;;  %5936 = vmatmul.mubr.f32.gmra.mrb[2].mxu1 %v8061_v41  ;;  %v1774_v26 = vsel %vm1760_vm1, %v8076_v8, 0  ;;  %v8091_v27 = vand.u32 4294901760, %v1777_v10  ;;  %v1896_v6 = vand.u32 4294901760, %v1895_v19 }
 0x1c5   : > { %7315 = vtanh.f32 %v6961_v39  ;;  %v5872_v36 = vpop.f32.mrb[12].mxu0  ;;  %v1886_v37 = vand.u32 4294901760, %v1885_v9  ;;  %v8093_v38 = vand.u32 4294901760, %v1774_v26  ;;  %6653 = vmatpush3.bf16.msra.mxu1 %v8006_v43  ;;  %v9276_v42 = vand.u32 4294901760, %v8086_v14 }
 0x1c6   : > { %v8097_v58 = vpop.eup %7305  ;;  %v6962_v59 = vadd.f32 %v5872_v36, %v8020_v22  ;;  %v1707_v5 = vpop.f32.mrb[13].mxu0  ;;  %v9273_v13 = vand.u32 4294901760, %v8074_v20  ;;  %v8102_v17 = vsub.f32 %v1777_v10, %v8091_v27  ;;  %6655 = vmatprep.subr.bf16.mxu1 %v8010_v51 }
 0x1c7   : > { %v8105_v56 = vpop.eup %7307  ;;  %v6963_v63 = vadd.f32 %v8020_v22, %v1707_v5  ;;  %5892 = vmatprep.mubr.f32.mxu0 %v1886_v37  ;;  %5938 = vmatprep.mubr.f32.mxu1 %v8093_v38  ;;  %v1905_v43 = vsub.f32 %v8086_v14, %v9276_v42  ;;  %v1783_v62 = vsel %vm1760_vm1, %v8097_v58, 0  ;;  %v8115_v1 = vsub.f32 %v1774_v26, %v8093_v38 }
 0x1c8   : > { %7317 = vtanh.f32 %v6962_v59  ;;  %5893 = vmatmul.mubr.f32.vlgmr.msra.gmra.mrb[16].mxu0 %v1896_v6  ;;  %5939 = vmatmul.mubr.f32.gmra.mrb[4].mxu1 %v8091_v27  ;;  %v1780_v40 = vsel %vm1760_vm1, %v8105_v56, 0  ;;  %v1915_v47 = vsub.f32 %v8074_v20, %v9273_v13  ;;  %v8123_v29 = vand.u32 4294901760, %v1783_v62 }
 0x1c9   : > { %7319 = vtanh.f32 %v6963_v63  ;;  %v5875_v18 = vpop.f32.mrb[14].mxu0  ;;  %v1906_v19 = vand.u32 4294901760, %v1905_v43  ;;  %v8125_v39 = vand.u32 4294901760, %v1780_v40  ;;  %v9272_v9 = vand.u32 4294901760, %v8115_v1  ;;  %6657 = vmatpush3.bf16.msra.mxu1 %v8010_v51 }
 0x1ca   : > { %v8129_v10 = vpop.eup %7309  ;;  %v6964_v26 = vadd.f32 %v5875_v18, %v8020_v22  ;;  %v1719_v36 = vpop.f32.mrb[15].mxu0  ;;  %v1916_v37 = vand.u32 4294901760, %v1915_v47  ;;  %v9270_v59 = vand.u32 4294901760, %v8102_v17  ;;  %v8134_v5 = vsub.f32 %v1783_v62, %v8123_v29  ;;  %6659 = vmatprep.subr.bf16.mxu1 %v8014_v53 }
 0x1cb   : > { %9334 = vst [vmem:[#allocation8_spill] sm:$0xff] %v8129_v10  ;;  %v8137_v6 = vpop.eup %7311  ;;  %v6965_v63 = vadd.f32 %v8020_v22, %v1719_v36  ;;  %5895 = vmatprep.mubr.f32.mxu0 %v1906_v19  ;;  %5941 = vmatprep.mubr.f32.mxu1 %v8125_v39  ;;  %v1925_v51 = vsub.f32 %v8115_v1, %v9272_v9  ;;  %v1789_v43 = vsel %vm1760_vm1, %v8129_v10, 0 }
 0x1cc   : > { %v8147_v47 = vsub.f32 %v1780_v40, %v8125_v39  ;;  %7321 = vtanh.f32 %v6964_v26  ;;  %5896 = vmatmul.mubr.f32.gmra.mrb[18].mxu0 %v1916_v37  ;;  %5942 = vmatmul.mubr.f32.gmra.mrb[6].mxu1 %v8123_v29  ;;  %v1786_v22 = vsel %vm1760_vm1, %v8137_v6, 0  ;;  %v1935_v62 = vsub.f32 %v8102_v17, %v9270_v59 }
 0x1cd   : > { %v8155_v18 = vand.u32 4294901760, %v1789_v43  ;;  %7323 = vtanh.f32 %v6965_v63  ;;  %v1926_v19 = vand.u32 4294901760, %v1925_v51  ;;  %v8157_v36 = vand.u32 4294901760, %v1786_v22  ;;  %6661 = vmatpush3.bf16.msra.mxu1 %v8014_v53 }
 0x1ce   : > { %v9271_v40 = vand.u32 4294901760, %v8147_v47  ;;  %v8161_v26 = vpop.eup %7313  ;;  %v1936_v37 = vand.u32 4294901760, %v1935_v62  ;;  %v9277_v61 = vand.u32 4294901760, %v8134_v5  ;;  %6663 = vmatprep.subr.bf16.mxu1 %v7966_v33 }
 0x1cf   : > { %9335 = vst [vmem:[#allocation9_spill] sm:$0xff] %v8161_v26  ;;  %v8165_v52 = vsub.f32 %v1789_v43, %v8155_v18  ;;  %v8168_v59 = vpop.eup %7315  ;;  %5898 = vmatprep.mubr.f32.mxu0 %v1926_v19  ;;  %5944 = vmatprep.mubr.f32.mxu1 %v8157_v36  ;;  %v1795_v53 = vsel %vm1760_vm1, %v8161_v26, 0  ;;  %v8177_v51 = vsub.f32 %v1786_v22, %v8157_v36 }
 0x1d0   : > { %9336 = vst [vmem:[#allocation10_spill] sm:$0xff] %v8168_v59  ;;  %v1945_v63 = vsub.f32 %v8147_v47, %v9271_v40  ;;  %5899 = vmatmul.mubr.f32.gmra.mrb[20].mxu0 %v1936_v37  ;;  %5945 = vmatmul.mubr.f32.gmra.mrb[8].mxu1 %v8155_v18  ;;  %v1792_v43 = vsel %vm1760_vm1, %v8168_v59, 0  ;;  %v1955_v62 = vsub.f32 %v8134_v5, %v9277_v61  ;;  %v8185_v19 = vand.u32 4294901760, %v1795_v53 }
 0x1d1   : > { %v9279_v40 = vand.u32 4294901760, %v8165_v52  ;;  %v8188_v13 = vand.u32 4294901760, %v1792_v43  ;;  %v9282_v22 = vand.u32 4294901760, %v8177_v51 }
 0x1d2   : > { %v1946_v9 = vand.u32 4294901760, %v1945_v63  ;;  %v8191_v30 = vpop.eup %7317  ;;  %v1956_v37 = vand.u32 4294901760, %v1955_v62  ;;  %v8197_v42 = vsub.f32 %v1795_v53, %v8185_v19 }
 0x1d3   : > { %9337 = vst [vmem:[#allocation11_spill] sm:$0xff] %v8191_v30  ;;  %v1975_v12 = vsub.f32 %v8165_v52, %v9279_v40  ;;  %v8199_v61 = vpop.eup %7319  ;;  %5947 = vmatprep.mubr.f32.mxu1 %v8188_v13  ;;  %v1965_v63 = vsub.f32 %v8177_v51, %v9282_v22  ;;  %v1801_v28 = vsel %vm1760_vm1, %v8191_v30, 0  ;;  %v8208_v62 = vsub.f32 %v1792_v43, %v8188_v13 }
 0x1d4   : > { %9338 = vst [vmem:[#allocation12_spill] sm:$0xff] %v8199_v61  ;;  %5901 = vmatprep.mubr.f32.mxu0 %v1946_v9  ;;  %5948 = vmatmul.mubr.f32.gmra.mrb[10].mxu1 %v8185_v19  ;;  %v1798_v53 = vsel %vm1760_vm1, %v8199_v61, 0  ;;  %v8213_v40 = vand.u32 4294901760, %v1801_v28  ;;  %v9287_v9 = vand.u32 4294901760, %v8197_v42 }
 0x1d5   : > { %5902 = vmatmul.mubr.f32.gmra.mrb[22].mxu0 %v1956_v37  ;;  %v1966_v4 = vand.u32 4294901760, %v1965_v63  ;;  %v8216_v3 = vand.u32 4294901760, %v1798_v53  ;;  %v9290_v22 = vand.u32 4294901760, %v8208_v62  ;;  %v1976_v35 = vand.u32 4294901760, %v1975_v12 }
 0x1d6   : > { %v8219_v23 = vpop.eup %7321  ;;  %v1995_v43 = vsub.f32 %v8197_v42, %v9287_v9  ;;  %v8225_v37 = vsub.f32 %v1801_v28, %v8213_v40 }
 0x1d7   : > { %9339 = vst [vmem:[#allocation13_spill] sm:$0xff] %v8219_v23  ;;  %v8227_v32 = vpop.eup %7323  ;;  %5904 = vmatprep.mubr.f32.mxu0 %v1966_v4  ;;  %5950 = vmatprep.mubr.f32.mxu1 %v8216_v3  ;;  %v1985_v63 = vsub.f32 %v8208_v62, %v9290_v22  ;;  %v1807_v30 = vsel %vm1760_vm1, %v8219_v23, 0  ;;  %v8236_v12 = vsub.f32 %v1798_v53, %v8216_v3 }
 0x1d8   : > { %9340 = vst [vmem:[#allocation14_spill] sm:$0xff] %v8227_v32  ;;  %5951 = vmatmul.mubr.f32.gmra.mrb[12].mxu1 %v8213_v40  ;;  %v1804_v28 = vsel %vm1760_vm1, %v8227_v32, 0  ;;  %v8241_v9 = vand.u32 4294901760, %v1807_v30  ;;  %v9293_v4 = vand.u32 4294901760, %v8225_v37  ;;  %v1996_v59 = vand.u32 4294901760, %v1995_v43 }
 0x1d9   : > { %5905 = vmatmul.mubr.f32.gmra.mrb[24].mxu0 %v1976_v35  ;;  %v1986_v61 = vand.u32 4294901760, %v1985_v63  ;;  %v8244_v26 = vand.u32 4294901760, %v1804_v28  ;;  %v2004_v22 = vand.u32 4294901760, %v8236_v12 }
 0x1da   : > { %v2015_v53 = vsub.f32 %v8225_v37, %v9293_v4  ;;  %v8251_v35 = vsub.f32 %v1807_v30, %v8241_v9 }
 0x1db   : > { %5907 = vmatprep.mubr.f32.mxu0 %v1986_v61  ;;  %5953 = vmatprep.mubr.f32.mxu1 %v8244_v26  ;;  %v2005_v23 = vsub.f32 %v8236_v12, %v2004_v22  ;;  %v8258_v63 = vsub.f32 %v1804_v28, %v8244_v26 }
 0x1dc   : > { %5954 = vmatmul.mubr.f32.gmra.mrb[14].mxu1 %v8241_v9  ;;  %v2034_v43 = vand.u32 4294901760, %v8251_v35  ;;  %v2016_v61 = vand.u32 4294901760, %v2015_v53 }
 0x1dd   : > { %5908 = vmatmul.mubr.f32.gmra.mrb[26].mxu0 %v1996_v59  ;;  %5972 = vmatprep.mubr.f32.mxu1 %v8055_v2  ;;  %v2006_v4 = vand.u32 4294901760, %v2005_v23  ;;  %v2024_v30 = vand.u32 4294901760, %v8258_v63  ;;  %v9342_v23 = vand.u32 4294901760, %v7934_v25  ;;  %v9344_v25 = vand.u32 4294901760, %v7946_v49 }
 0x1de   : > { %v2035_v32 = vsub.f32 %v8251_v35, %v2034_v43  ;;  %v9351_v49 = vand.u32 4294901760, %v8115_v1 }
 0x1df   : > { %5910 = vmatprep.mubr.f32.mxu0 %v2006_v4  ;;  %v2025_v10 = vsub.f32 %v8258_v63, %v2024_v30  ;;  %v9345_v4 = vand.u32 4294901760, %v7948_v54  ;;  %v9352_v54 = vand.u32 4294901760, %v7970_v46  ;;  %v9358_v46 = vand.u32 4294901760, %v8165_v52 }
 0x1e0   : > { %5973 = vmatmul.mubr.f32.vlgmr.msra.gmra.mrb[0].mxu1 %v8046_v0  ;;  %v2036_v28 = vand.u32 4294901760, %v2035_v32  ;;  %v9341_v32 = vand.u32 4294901760, %v7932_v24  ;;  %v9343_v24 = vand.u32 4294901760, %v8055_v2  ;;  %v9350_v2 = vand.u32 4294901760, %v8074_v20 }
 0x1e1   : > { %5911 = vmatmul.mubr.f32.gmra.mrb[28].mxu0 %v2016_v61  ;;  %5975 = vmatprep.mubr.f32.mxu1 %v8086_v14  ;;  %v2026_v59 = vand.u32 4294901760, %v2025_v10  ;;  %v6682_v53 = vpack.c.bf16 %v9345_v4, %v9344_v25  ;;  %v9346_v61 = vand.u32 4294901760, %v8046_v0  ;;  %v9353_v0 = vand.u32 4294901760, %v7972_v50 }
 0x1e2   : > { %6665 = vmatpush3.bf16.msra.mxu1 %v7966_v33  ;;  %v6678_v10 = vpack.c.bf16 %v9342_v23, %v9341_v32  ;;  %v9354_v32 = vand.u32 4294901760, %v8102_v17  ;;  %v9359_v50 = vand.u32 4294901760, %v8208_v62 }
 0x1e3   : > { %6667 = vmatprep.subr.bf16.mxu1 %v7984_v7  ;;  %5913 = vmatprep.mubr.f32.mxu0 %v2026_v59  ;;  %v9347_v59 = vand.u32 4294901760, %v8086_v14  ;;  %v6690_v14 = vpack.c.bf16 %v9353_v0, %v9352_v54 }
 0x1e4   : > { %5976 = vmatmul.mubr.f32.gmra.mrb[2].mxu1 %v8074_v20  ;;  %v9357_v20 = vand.u32 4294901760, %v8177_v51 }
 0x1e5   : > { %5914 = vmatmul.mubr.f32.gmra.mrb[30].mxu0 %v2036_v28  ;;  %5978 = vmatprep.mubr.f32.mxu1 %v8115_v1  ;;  %v9361_v1 = vand.u32 4294901760, %v8225_v37 }
 0x1e6   : > { %6669 = vmatpush3.bf16.msra.mxu1 %v7984_v7 }
 0x1e7   : > { %6671 = vmatprep.subr.bf16.mxu1 %v7994_v11 }
 0x1e8   : > { %5979 = vmatmul.mubr.f32.gmra.mrb[4].mxu1 %v8102_v17  ;;  %v9360_v17 = vand.u32 4294901760, %v8197_v42 }
 0x1e9   : > { %5981 = vmatprep.mubr.f32.mxu1 %v8147_v47 }
 0x1ea   : > { %6673 = vmatpush3.bf16.msra.mxu1 %v7994_v11 }
 0x1eb   : > { %6675 = vmatprep.subr.bf16.mxu1 %v7998_v44 }
 0x1ec   : > { %5982 = vmatmul.mubr.f32.gmra.mrb[6].mxu1 %v8134_v5 }
 0x1ed   : > { %5984 = vmatprep.mubr.f32.mxu1 %v8177_v51 }
 0x1ee   : > { %6677 = vmatpush3.bf16.msra.mxu1 %v7998_v44 }
 0x1ef   : > { %6679 = vmatprep.subr.bf16.mxu1 %v6678_v10 }
 0x1f0   : > { %5985 = vmatmul.mubr.f32.gmra.mrb[8].mxu1 %v8165_v52  ;;  %v3024_v52 = vld [vmem:[%s8364_s16 + $0x8] sm:$0xff] }
 0x1f1   : > { %5987 = vmatprep.mubr.f32.mxu1 %v8208_v62 }
 0x1f4   : > { %5988 = vmatmul.mubr.f32.gmra.mrb[10].mxu1 %v8197_v42 }
 0x1f5   : > { %5990 = vmatprep.mubr.f32.mxu1 %v8236_v12 }
 0x1f8   : > { %5991 = vmatmul.mubr.f32.gmra.mrb[12].mxu1 %v8225_v37 }
 0x1f9   : > { %5993 = vmatprep.mubr.f32.mxu1 %v8258_v63  ;;  %v9348_v63 = vand.u32 4294901760, %v7960_v21  ;;  %v9355_v21 = vand.u32 4294901760, %v8147_v47  ;;  %v3028_v47 = vld [vmem:[%s8364_s16 + $0x28] sm:$0xff] }
 0x1fc   : > { %5994 = vmatmul.mubr.f32.gmra.mrb[14].mxu1 %v8251_v35  ;;  %v9349_v35 = vand.u32 4294901760, %v7962_v31  ;;  %v9356_v31 = vand.u32 4294901760, %v8134_v5  ;;  %v3027_v5 = vld [vmem:[%s8364_s16 + $0x20] sm:$0xff] }
 0x1fd   : > { %6012 = vmatprep.mubr.f32.mxu1 %v9343_v24 }
 0x1fe   : > { %v6686_v28 = vpack.c.bf16 %v9349_v35, %v9348_v63 }
 0x200   : > { %6013 = vmatmul.mubr.f32.vlgmr.msra.gmra.mrb[0].mxu1 %v9346_v61 }
 0x201   : > { %6015 = vmatprep.mubr.f32.mxu1 %v9347_v59  ;;  %6681 = vmatpush3.bf16.msra.mxu1 %v6678_v10 }
 0x202   : > { %6683 = vmatprep.subr.bf16.mxu1 %v6682_v53 }
 0x204   : > { %6016 = vmatmul.mubr.f32.gmra.mrb[2].mxu1 %v9350_v2 }
 0x205   : > { %6018 = vmatprep.mubr.f32.mxu1 %v9351_v49  ;;  %6685 = vmatpush3.bf16.msra.mxu1 %v6682_v53 }
 0x206   : > { %6687 = vmatprep.subr.bf16.mxu1 %v6686_v28 }
 0x208   : > { %6019 = vmatmul.mubr.f32.gmra.mrb[4].mxu1 %v9354_v32 }
 0x209   : > { %6021 = vmatprep.mubr.f32.mxu1 %v9355_v21  ;;  %6689 = vmatpush3.bf16.msra.mxu1 %v6686_v28 }
 0x20a   : > { %6691 = vmatprep.subr.bf16.mxu1 %v6690_v14 }
 0x20c   : > { %6022 = vmatmul.mubr.f32.gmra.mrb[6].mxu1 %v9356_v31 }
 0x20d   : > { %6024 = vmatprep.mubr.f32.mxu1 %v9357_v20  ;;  %6693 = vmatpush3.bf16.msra.mxu1 %v6690_v14 }
 0x20e   : > { %6695 = vmatprep.subr.bf16.mxu1 %v7966_v33 }
 0x210   : > { %6025 = vmatmul.mubr.f32.gmra.mrb[8].mxu1 %v9358_v46 }
 0x211   : > { %6027 = vmatprep.mubr.f32.mxu1 %v9359_v50 }
 0x214   : > { %6028 = vmatmul.mubr.f32.gmra.mrb[10].mxu1 %v9360_v17 }
 0x215   : > { %6030 = vmatprep.mubr.f32.mxu1 %v2004_v22  ;;  %v3030_v22 = vld [vmem:[%s8364_s16 + $0x38] sm:$0xff] }
 0x218   : > { %6031 = vmatmul.mubr.f32.gmra.mrb[12].mxu1 %v9361_v1 }
 0x219   : > { %6033 = vmatprep.mubr.f32.mxu1 %v2024_v30 }
 0x21c   : > { %6034 = vmatmul.mubr.f32.gmra.mrb[14].mxu1 %v2034_v43 }
 0x21d   : > { %6052 = vmatprep.mubr.f32.mxu1 %v8040_v45 }
 0x220   : > { %6053 = vmatmul.mubr.f32.vlgmr.msra.gmra.mrb[0].mxu1 %v8038_v16 }
 0x221   : > { %6055 = vmatprep.mubr.f32.mxu1 %v8063_v48  ;;  %6697 = vmatpush3.bf16.msra.mxu1 %v7966_v33  ;;  %v3023_v33 = vld [vmem:[%s8364_s16] sm:$0xff] }
 0x222   : > { %6699 = vmatprep.subr.bf16.mxu1 %v7984_v7 }
 0x224   : > { %6056 = vmatmul.mubr.f32.gmra.mrb[2].mxu1 %v8061_v41 }
 0x225   : > { %6058 = vmatprep.mubr.f32.mxu1 %v8093_v38  ;;  %6701 = vmatpush3.bf16.msra.mxu1 %v7984_v7  ;;  %v3087_v7 = vand.u32 4294901760, %v3023_v33 }
 0x226   : > { %6703 = vmatprep.subr.bf16.mxu1 %v7994_v11 }
 0x227   : > { %v8428_v24 = vsub.f32 %v3023_v33, %v3087_v7 }
 0x228   : > { %6059 = vmatmul.mubr.f32.gmra.mrb[4].mxu1 %v8091_v27 }
 0x229   : > { %6061 = vmatprep.mubr.f32.mxu1 %v8125_v39  ;;  %6705 = vmatpush3.bf16.msra.mxu1 %v7994_v11  ;;  %v3090_v11 = vand.u32 4294901760, %v3024_v52  ;;  %v9310_v53 = vand.u32 4294901760, %v8428_v24 }
 0x22a   : > { %6707 = vmatprep.subr.bf16.mxu1 %v7998_v44 }
 0x22b   : > { %v8430_v25 = vsub.f32 %v3024_v52, %v3090_v11  ;;  %v3323_v63 = vsub.f32 %v8428_v24, %v9310_v53 }
 0x22c   : > { %6062 = vmatmul.mubr.f32.gmra.mrb[6].mxu1 %v8123_v29 }
 0x22d   : > { %6064 = vmatprep.mubr.f32.mxu1 %v8157_v36  ;;  %6709 = vmatpush3.bf16.msra.mxu1 %v7998_v44  ;;  %v8370_v44 = vpack.c.bf16 %v3090_v11, %v3087_v7  ;;  %v9309_v61 = vand.u32 4294901760, %v8430_v25  ;;  %v3324_v54 = vand.u32 4294901760, %v3323_v63 }
 0x22f   : > { %6711 = vmatprep.subr.bf16.mxu0 %v8370_v44  ;;  %v3330_v35 = vsub.f32 %v8430_v25, %v9309_v61  ;;  %v9373_v61 = vld [vmem:[#allocation12_spill] sm:$0xff] }
 0x230   : > { %6065 = vmatmul.mubr.f32.gmra.mrb[8].mxu1 %v8155_v18  ;;  %6713 = vmatpush3.bf16.msra.mxu0 %v8370_v44 }
 0x231   : > { %6067 = vmatprep.mubr.f32.mxu1 %v8188_v13  ;;  %v3331_v0 = vand.u32 4294901760, %v3330_v35 }
 0x233   : > { %v8452_v21 = vpack.c.bf16 %v3331_v0, %v3324_v54 }
 0x234   : > { %6068 = vmatmul.mubr.f32.gmra.mrb[10].mxu1 %v8185_v19 }
 0x235   : > { %6070 = vmatprep.mubr.f32.mxu1 %v8216_v3 }
 0x238   : > { %6071 = vmatmul.mubr.f32.gmra.mrb[12].mxu1 %v8213_v40 }
 0x239   : > { %6073 = vmatprep.mubr.f32.mxu1 %v8244_v26 }
 0x23c   : > { %6074 = vmatmul.mubr.f32.gmra.mrb[14].mxu1 %v8241_v9 }
 0x23d   : > { %6092 = vmatprep.mubr.f32.mxu1 %v8040_v45 }
 0x240   : > { %6093 = vmatmul.mubr.f32.vlgmr.msra.gmra.mrb[0].mxu1 %v8038_v16 }
 0x241   : > { %6095 = vmatprep.mubr.f32.mxu1 %v8063_v48 }
 0x244   : > { %6096 = vmatmul.mubr.f32.gmra.mrb[2].mxu1 %v8061_v41 }
 0x245   : > { %6098 = vmatprep.mubr.f32.mxu1 %v8093_v38  ;;  %v3026_v38 = vld [vmem:[%s8364_s16 + $0x18] sm:$0xff] }
 0x246   : > { %v3096_v42 = vand.u32 4294901760, %v3026_v38 }
 0x248   : > { %6099 = vmatmul.mubr.f32.gmra.mrb[4].mxu1 %v8091_v27  ;;  %v3025_v27 = vld [vmem:[%s8364_s16 + $0x10] sm:$0xff]  ;;  %v8448_v49 = vsub.f32 %v3026_v38, %v3096_v42 }
 0x249   : > { %6101 = vmatprep.mubr.f32.mxu1 %v8125_v39 }
 0x24a   : > { %v9305_v32 = vand.u32 4294901760, %v8448_v49 }
 0x24c   : > { %6102 = vmatmul.mubr.f32.gmra.mrb[6].mxu1 %v8123_v29  ;;  %v3344_v20 = vsub.f32 %v8448_v49, %v9305_v32 }
 0x24d   : > { %6104 = vmatprep.mubr.f32.mxu1 %v8157_v36  ;;  %v3102_v36 = vand.u32 4294901760, %v3028_v47 }
 0x24e   : > { %v3345_v50 = vand.u32 4294901760, %v3344_v20  ;;  %v5166_v20 = vld [vmem:[%s499_s20] ss:$0 sm:$0xff]  ;;  %s7405_s20 = scalar_lea.vmem %s7404_s19, 32 }
 0x24f   : > { %v8465_v33 = vsub.f32 %v3028_v47, %v3102_v36 }
 0x250   : > { %6105 = vmatmul.mubr.f32.gmra.mrb[8].mxu1 %v8155_v18  ;;  %v3099_v18 = vand.u32 4294901760, %v3027_v5 }
 0x251   : > { %6107 = vmatprep.mubr.f32.mxu1 %v8188_v13  ;;  %v9298_v7 = vand.u32 4294901760, %v8465_v33 }
 0x252   : > { %v8408_v51 = vpack.c.bf16 %v3102_v36, %v3099_v18  ;;  %v8463_v1 = vsub.f32 %v3027_v5, %v3099_v18 }
 0x254   : > { %6108 = vmatmul.mubr.f32.gmra.mrb[10].mxu1 %v8185_v19  ;;  %v3029_v19 = vld [vmem:[%s8364_s16 + $0x30] sm:$0xff]  ;;  %v9300_v52 = vand.u32 4294901760, %v8463_v1  ;;  %v8501_v0 = vpack.c.bf16 %v8465_v33, %v8463_v1  ;;  %s5005_s16 = scalar_lea.sflag [#allocation5], %s469_s0 }
 0x255   : > { %6110 = vmatprep.mubr.f32.mxu1 %v8216_v3  ;;  %v3093_v3 = vand.u32 4294901760, %v3025_v27  ;;  %v3105_v62 = vand.u32 4294901760, %v3029_v19 }
 0x256   : > { %v3351_v11 = vsub.f32 %v8463_v1, %v9300_v52 }
 0x257   : > { %v8398_v39 = vpack.c.bf16 %v3096_v42, %v3093_v3  ;;  %v8446_v2 = vsub.f32 %v3025_v27, %v3093_v3  ;;  %v3358_v27 = vsub.f32 %v8465_v33, %v9298_v7  ;;  %v8475_v38 = vsub.f32 %v3029_v19, %v3105_v62 }
 0x258   : > { %6111 = vmatmul.mubr.f32.gmra.mrb[12].mxu1 %v8213_v40  ;;  %v3352_v42 = vand.u32 4294901760, %v3351_v11 }
 0x259   : > { %6113 = vmatprep.mubr.f32.mxu1 %v8244_v26  ;;  %6715 = vmatprep.subr.bf16.mxu0 %v8398_v39  ;;  %v9306_v14 = vand.u32 4294901760, %v8446_v2  ;;  %v3359_v5 = vand.u32 4294901760, %v3358_v27  ;;  %v9297_v47 = vand.u32 4294901760, %v8475_v38  ;;  %v8497_v54 = vpack.c.bf16 %v8448_v49, %v8446_v2 }
 0x25a   : > { %6717 = vmatpush3.bf16.msra.mxu0 %v8398_v39 }
 0x25b   : > { %6719 = vmatprep.subr.bf16.mxu0 %v8408_v51  ;;  %v3337_v31 = vsub.f32 %v8446_v2, %v9306_v14  ;;  %v8481_v36 = vpack.c.bf16 %v3359_v5, %v3352_v42  ;;  %v3365_v63 = vsub.f32 %v8475_v38, %v9297_v47 }
 0x25c   : > { %6114 = vmatmul.mubr.f32.gmra.mrb[14].mxu1 %v8241_v9  ;;  %v3108_v9 = vand.u32 4294901760, %v3030_v22 }
 0x25d   : > { %v3338_v46 = vand.u32 4294901760, %v3337_v31 }
 0x25e   : > { %6721 = vmatpush3.bf16.msra.mxu0 %v8408_v51  ;;  %v8418_v43 = vpack.c.bf16 %v3108_v9, %v3105_v62  ;;  %v8477_v3 = vsub.f32 %v3030_v22, %v3108_v9  ;;  %v3366_v62 = vand.u32 4294901760, %v3365_v63  ;;  %v8493_v9 = vpack.c.bf16 %v8430_v25, %v8428_v24 }
 0x25f   : > { %v8461_v17 = vpack.c.bf16 %v3345_v50, %v3338_v46 }
 0x260   : > { %6723 = vmatprep.subr.bf16.mxu0 %v8418_v43  ;;  %v9296_v18 = vand.u32 4294901760, %v8477_v3  ;;  %v8505_v31 = vpack.c.bf16 %v8477_v3, %v8475_v38 }
 0x262   : > { %6725 = vmatpush3.bf16.msra.mxu0 %v8418_v43  ;;  %v3372_v19 = vsub.f32 %v8477_v3, %v9296_v18 }
 0x263   : > { %6727 = vmatprep.subr.bf16.mxu0 %v8452_v21 }
 0x264   : > { %v3373_v35 = vand.u32 4294901760, %v3372_v19 }
 0x266   : > { %v8489_v22 = vpack.c.bf16 %v3373_v35, %v3366_v62 }
 0x29b   : > { %v8384_v16 = vpop.f32.mrb[16].mxu0 }
 0x29c   : > { %v8386_v45 = vpop.f32.mrb[17].mxu0  ;;  %v1899_v46 = vadd.f32 %v8384_v16, %v5166_v20 }
 0x29d   : > { %v1889_v50 = vadd.f32 %v5166_v20, %v8386_v45 }
 0x29f   : > { %v8388_v41 = vpop.f32.mrb[18].mxu0 }
 0x2a0   : > { %v8390_v48 = vpop.f32.mrb[19].mxu0  ;;  %v1919_v63 = vadd.f32 %v8388_v41, %v5166_v20 }
 0x2a1   : > { %v1909_v19 = vadd.f32 %v5166_v20, %v8390_v48 }
 0x2a3   : > { %v8394_v13 = vpop.f32.mrb[20].mxu0 }
 0x2a4   : > { %v8396_v29 = vpop.f32.mrb[21].mxu0  ;;  %v1939_v7 = vadd.f32 %v8394_v13, %v5166_v20 }
 0x2a5   : > { %v1929_v16 = vadd.f32 %v5166_v20, %v8396_v29 }
 0x2a8   : > { %v8403_v40 = vpop.f32.mrb[22].mxu0 }
 0x2a9   : > { %v8406_v26 = vpop.f32.mrb[23].mxu0  ;;  %v1959_v41 = vadd.f32 %v8403_v40, %v5166_v20 }
 0x2aa   : > { %v1949_v48 = vadd.f32 %v5166_v20, %v8406_v26 }
 0x2ac   : > { %v8413_v37 = vpop.f32.mrb[24].mxu0 }
 0x2ad   : > { %v8416_v12 = vpop.f32.mrb[25].mxu0 }
 0x2b0   : > { %v8421_v30 = vpop.f32.mrb[26].mxu0 }
 0x2b1   : > { %v8424_v23 = vpop.f32.mrb[27].mxu0  ;;  %v1999_v26 = vadd.f32 %v8421_v30, %v5166_v20 }
 0x2b4   : > { %v8426_v10 = vpop.f32.mrb[28].mxu0 }
 0x2b5   : > { %v8432_v4 = vpop.f32.mrb[29].mxu0 }
 0x2b6   : > { %v2009_v30 = vadd.f32 %v5166_v20, %v8432_v4 }
 0x2b8   : > { %v8436_v59 = vpop.f32.mrb[30].mxu0 }
 0x2b9   : > { %v8444_v28 = vpop.f32.mrb[31].mxu0 }
 0x313   : > { %v6094_v11 = vpop.f32.mrb[0].mxu1 }
 0x314   : > { %v6967_v27 = vadd.f32 %v6094_v11, %v1899_v46  ;;  %v2897_v42 = vpop.f32.mrb[1].mxu1 }
 0x315   : > { %v6969_v5 = vadd.f32 %v2897_v42, %v1889_v50 }
 0x316   : > { %7325 = vtanh.f32 %v6967_v27 }
 0x317   : > { %7327 = vtanh.f32 %v6969_v5  ;;  %v6097_v62 = vpop.f32.mrb[2].mxu1 }
 0x318   : > { %v6971_v35 = vadd.f32 %v6097_v62, %v1919_v63  ;;  %v2909_v18 = vpop.f32.mrb[3].mxu1 }
 0x319   : > { %v6973_v47 = vadd.f32 %v2909_v18, %v1909_v19  ;;  %v1989_v19 = vadd.f32 %v5166_v20, %v8424_v23 }
 0x31a   : > { %7329 = vtanh.f32 %v6971_v35 }
 0x31b   : > { %7331 = vtanh.f32 %v6973_v47  ;;  %v6100_v45 = vpop.f32.mrb[4].mxu1  ;;  %v1979_v47 = vadd.f32 %v8413_v37, %v5166_v20 }
 0x31c   : > { %v6975_v46 = vadd.f32 %v6100_v45, %v1939_v7  ;;  %v2921_v11 = vpop.f32.mrb[5].mxu1  ;;  %v1969_v7 = vadd.f32 %v5166_v20, %v8416_v12 }
 0x31d   : > { %v6977_v50 = vadd.f32 %v2921_v11, %v1929_v16  ;;  %v2019_v16 = vadd.f32 %v8426_v10, %v5166_v20 }
 0x31e   : > { %7333 = vtanh.f32 %v6975_v46 }
 0x31f   : > { %7335 = vtanh.f32 %v6977_v50  ;;  %v6103_v27 = vpop.f32.mrb[6].mxu1 }
 0x320   : > { %v7326_v42 = vpop.eup %7325  ;;  %v6979_v5 = vadd.f32 %v6103_v27, %v1959_v41  ;;  %v2933_v18 = vpop.f32.mrb[7].mxu1  ;;  %v2039_v41 = vadd.f32 %v8436_v59, %v5166_v20  ;;  %v2029_v27 = vadd.f32 %v5166_v20, %v8444_v28 }
 0x321   : > { %v7328_v63 = vpop.eup %7327  ;;  %v8520_v13 = vadd.f32 %v7326_v42, %v8028_v57  ;;  %v6981_v29 = vadd.f32 %v2933_v18, %v1949_v48 }
 0x322   : > { %7337 = vtanh.f32 %v6979_v5  ;;  %v8525_v40 = vadd.f32 %v7328_v63, %v8031_v60 }
 0x323   : > { %v3042_v62 = vsel %vm1760_vm1, %v8520_v13, 0  ;;  %7339 = vtanh.f32 %v6981_v29  ;;  %v6106_v35 = vpop.f32.mrb[8].mxu1 }
 0x324   : > { %v7330_v57 = vpop.eup %7329  ;;  %v8532_v45 = vand.u32 4294901760, %v3042_v62  ;;  %v6983_v37 = vadd.f32 %v6106_v35, %v1979_v47  ;;  %v2945_v12 = vpop.f32.mrb[9].mxu1  ;;  %v3039_v60 = vsel %vm1760_vm1, %v8525_v40, 0 }
 0x325   : > { %v7332_v46 = vpop.eup %7331  ;;  %v6985_v11 = vadd.f32 %v2945_v12, %v1969_v7  ;;  %v8537_v23 = vand.u32 4294901760, %v3039_v60  ;;  %v8540_v50 = vadd.f32 %v7330_v57, %v8042_v55 }
 0x326   : > { %v8544_v10 = vsub.f32 %v3042_v62, %v8532_v45  ;;  %7341 = vtanh.f32 %v6983_v37  ;;  %v8547_v48 = vadd.f32 %v7332_v46, %v8048_v15 }
 0x327   : > { %7343 = vtanh.f32 %v6985_v11  ;;  %v6109_v42 = vpop.f32.mrb[10].mxu1  ;;  %v8551_v4 = vsub.f32 %v3039_v60, %v8537_v23  ;;  %v3048_v55 = vsel %vm1760_vm1, %v8540_v50, 0 }
 0x328   : > { %v7334_v5 = vpop.eup %7333  ;;  %v6987_v18 = vadd.f32 %v6109_v42, %v1999_v26  ;;  %v2957_v59 = vpop.f32.mrb[11].mxu1  ;;  %v9301_v63 = vand.u32 4294901760, %v8544_v10  ;;  %v3045_v29 = vsel %vm1760_vm1, %v8547_v48, 0  ;;  %v8558_v15 = vand.u32 4294901760, %v3048_v55 }
 0x329   : > { %v7336_v47 = vpop.eup %7335  ;;  %v6989_v28 = vadd.f32 %v2957_v59, %v1989_v19  ;;  %v9308_v20 = vand.u32 4294901760, %v8551_v4  ;;  %v8561_v7 = vand.u32 4294901760, %v3045_v29  ;;  %v8564_v62 = vadd.f32 %v7334_v5, %v8066_v34 }
 0x32a   : > { %7345 = vtanh.f32 %v6987_v18  ;;  %v3172_v26 = vsub.f32 %v8544_v10, %v9301_v63  ;;  %v8570_v35 = vsub.f32 %v3048_v55, %v8558_v15  ;;  %v8573_v57 = vadd.f32 %v7336_v47, %v8076_v8 }
 0x32b   : > { %9362 = vst [vmem:[#allocation15_spill] sm:$0xff] %v8564_v62  ;;  %7347 = vtanh.f32 %v6989_v28  ;;  %v6112_v19 = vpop.f32.mrb[12].mxu1  ;;  %v3162_v37 = vsub.f32 %v8551_v4, %v9308_v20  ;;  %v8579_v34 = vsub.f32 %v3045_v29, %v8561_v7  ;;  %v3054_v12 = vsel %vm1760_vm1, %v8564_v62, 0 }
 0x32c   : > { %9363 = vst [vmem:[#allocation16_spill] sm:$0xff] %v8573_v57  ;;  %v7338_v60 = vpop.eup %7337  ;;  %v6991_v46 = vadd.f32 %v6112_v19, %v2019_v16  ;;  %v2969_v11 = vpop.f32.mrb[13].mxu1  ;;  %v3173_v42 = vand.u32 4294901760, %v3172_v26  ;;  %v9299_v55 = vand.u32 4294901760, %v8570_v35  ;;  %v3051_v8 = vsel %vm1760_vm1, %v8573_v57, 0 }
 0x32d   : > { %v7340_v5 = vpop.eup %7339  ;;  %v6993_v18 = vadd.f32 %v2969_v11, %v2009_v30  ;;  %v3163_v59 = vand.u32 4294901760, %v3162_v37  ;;  %v9302_v47 = vand.u32 4294901760, %v8579_v34  ;;  %v8587_v28 = vand.u32 4294901760, %v3051_v8 }
 0x32e   : > { %7349 = vtanh.f32 %v6991_v46  ;;  %v3192_v29 = vsub.f32 %v8570_v35, %v9299_v55  ;;  %v8592_v16 = vand.u32 4294901760, %v3054_v12  ;;  %v8595_v26 = vadd.f32 %v7340_v5, %v8105_v56 }
 0x32f   : > { %7351 = vtanh.f32 %v6993_v18  ;;  %v6115_v19 = vpop.f32.mrb[14].mxu1  ;;  %6132 = vmatprep.mubr.f32.mxu0 %v3163_v59  ;;  %v3182_v30 = vsub.f32 %v8579_v34, %v9302_v47  ;;  %v8601_v37 = vsub.f32 %v3051_v8, %v8587_v28  ;;  %v8604_v46 = vadd.f32 %v7338_v60, %v8097_v58 }
 0x330   : > { %9364 = vst [vmem:[#allocation17_spill] sm:$0xff] %v8595_v26  ;;  %v7342_v11 = vpop.eup %7341  ;;  %v6995_v55 = vadd.f32 %v6115_v19, %v2039_v41  ;;  %v2981_v52 = vpop.f32.mrb[15].mxu1  ;;  %6133 = vmatmul.mubr.f32.vlgmr.msra.gmra.mrb[32].mxu0 %v3173_v42  ;;  %v3193_v63 = vand.u32 4294901760, %v3192_v29  ;;  %v8607_v56 = vsub.f32 %v3054_v12, %v8592_v16  ;;  %v3057_v5 = vsel %vm1760_vm1, %v8595_v26, 0  ;;  %v9367_v29 = vld [vmem:[#allocation8_spill] sm:$0xff] }
 0x331   : > { %9365 = vst [vmem:[#allocation18_spill] sm:$0xff] %v8604_v46  ;;  %v7344_v18 = vpop.eup %7343  ;;  %v6997_v59 = vadd.f32 %v2981_v52, %v2029_v27  ;;  %6729 = vmatpush3.bf16.msra.mxu0 %v8452_v21  ;;  %v3183_v8 = vand.u32 4294901760, %v3182_v30  ;;  %v9304_v47 = vand.u32 4294901760, %v8601_v37  ;;  %v8613_v58 = vand.u32 4294901760, %v3057_v5 }
 0x332   : > { %7353 = vtanh.f32 %v6995_v55  ;;  %v9303_v41 = vand.u32 4294901760, %v8607_v56  ;;  %6731 = vmatprep.subr.bf16.mxu0 %v8461_v17  ;;  %v3060_v12 = vsel %vm1760_vm1, %v8604_v46, 0  ;;  %v8620_v60 = vadd.f32 %v7344_v18, %v8137_v6 }
 0x333   : > { %7355 = vtanh.f32 %v6997_v59  ;;  %6135 = vmatprep.mubr.f32.mxu0 %v3183_v8  ;;  %v3202_v21 = vsub.f32 %v8601_v37, %v9304_v47  ;;  %v8626_v52 = vsub.f32 %v3057_v5, %v8613_v58  ;;  %v8628_v27 = vand.u32 4294901760, %v3060_v12  ;;  %v9369_v47 = vld [vmem:[#allocation10_spill] sm:$0xff] }
 0x334   : > { %9366 = vst [vmem:[#allocation19_spill] sm:$0xff] %v8620_v60  ;;  %v7346_v42 = vpop.eup %7345  ;;  %6136 = vmatmul.mubr.f32.gmra.mrb[34].mxu0 %v3193_v63  ;;  %v3212_v55 = vsub.f32 %v8607_v56, %v9303_v41  ;;  %v3063_v6 = vsel %vm1760_vm1, %v8620_v60, 0  ;;  %v8636_v19 = vadd.f32 %v7342_v11, %v9367_v29  ;;  %v9371_v29 = vld [vmem:[#allocation9_spill] sm:$0xff] }
 0x335   : > { %v7348_v30 = vpop.eup %7347  ;;  %v3203_v18 = vand.u32 4294901760, %v3202_v21  ;;  %6733 = vmatpush3.bf16.msra.mxu0 %v8461_v17  ;;  %v9307_v5 = vand.u32 4294901760, %v8626_v52  ;;  %v8641_v59 = vsub.f32 %v3060_v12, %v8628_v27  ;;  %v8643_v63 = vand.u32 4294901760, %v3063_v6 }
 0x336   : > { %9368 = vst [vmem:[#allocation8_spill] sm:$0xff] %v8636_v19  ;;  %v3213_v8 = vand.u32 4294901760, %v3212_v55  ;;  %v3066_v41 = vsel %vm1760_vm1, %v8636_v19, 0  ;;  %6735 = vmatprep.subr.bf16.mxu0 %v8481_v36  ;;  %v8649_v11 = vadd.f32 %v7348_v30, %v9369_v47  ;;  %v8652_v21 = vadd.f32 %v7346_v42, %v9371_v29 }
 0x337   : > { %6138 = vmatprep.mubr.f32.mxu0 %v3203_v18  ;;  %v3222_v17 = vsub.f32 %v8626_v52, %v9307_v5  ;;  %v9312_v12 = vand.u32 4294901760, %v8641_v59  ;;  %v8659_v55 = vsub.f32 %v3063_v6, %v8643_v63  ;;  %v8661_v32 = vand.u32 4294901760, %v3066_v41 }
 0x338   : > { %9370 = vst [vmem:[#allocation10_spill] sm:$0xff] %v8649_v11  ;;  %9372 = vst [vmem:[#allocation9_spill] sm:$0xff] %v8652_v21  ;;  %v7350_v14 = vpop.eup %7349  ;;  %6139 = vmatmul.mubr.f32.gmra.mrb[36].mxu0 %v3213_v8  ;;  %v3069_v47 = vsel %vm1760_vm1, %v8649_v11, 0  ;;  %v3072_v42 = vsel %vm1760_vm1, %v8652_v21, 0  ;;  %v9375_v11 = vld [vmem:[#allocation11_spill] sm:$0xff] }
 0x339   : > { %v7352_v30 = vpop.eup %7351  ;;  %v3223_v18 = vand.u32 4294901760, %v3222_v17  ;;  %v3232_v29 = vsub.f32 %v8641_v59, %v9312_v12  ;;  %v9315_v5 = vand.u32 4294901760, %v8659_v55  ;;  %v8672_v6 = vsub.f32 %v3066_v41, %v8661_v32  ;;  %6737 = vmatpush3.bf16.msra.mxu0 %v8481_v36 }
 0x33a   : > { %v8675_v8 = vand.u32 4294901760, %v3069_v47  ;;  %v8677_v20 = vand.u32 4294901760, %v3072_v42  ;;  %v8680_v53 = vadd.f32 %v7352_v30, %v9373_v61  ;;  %v8683_v17 = vadd.f32 %v7350_v14, %v9375_v11  ;;  %6739 = vmatprep.subr.bf16.mxu0 %v8489_v22 }
 0x33b   : > { %6141 = vmatprep.mubr.f32.mxu0 %v3223_v18  ;;  %v3233_v12 = vand.u32 4294901760, %v3232_v29  ;;  %v3242_v41 = vsub.f32 %v8659_v55, %v9315_v5  ;;  %v9320_v36 = vand.u32 4294901760, %v8672_v6 }
 0x33c   : > { %9374 = vst [vmem:[#allocation12_spill] sm:$0xff] %v8680_v53  ;;  %9376 = vst [vmem:[#allocation11_spill] sm:$0xff] %v8683_v17  ;;  %v7354_v21 = vpop.eup %7353  ;;  %v8691_v60 = vsub.f32 %v3069_v47, %v8675_v8  ;;  %v8694_v61 = vsub.f32 %v3072_v42, %v8677_v20  ;;  %v3075_v14 = vsel %vm1760_vm1, %v8680_v53, 0  ;;  %v3078_v11 = vsel %vm1760_vm1, %v8683_v17, 0  ;;  %v9377_v53 = vld [vmem:[#allocation14_spill] sm:$0xff]  ;;  %v9379_v17 = vld [vmem:[#allocation13_spill] sm:$0xff] }
 0x33d   : > { %v7356_v30 = vpop.eup %7355  ;;  %6142 = vmatmul.mubr.f32.gmra.mrb[38].mxu0 %v3233_v12  ;;  %v3243_v18 = vand.u32 4294901760, %v3242_v41  ;;  %v3252_v29 = vsub.f32 %v8672_v6, %v9320_v36  ;;  %v8703_v5 = vand.u32 4294901760, %v3075_v14  ;;  %v8705_v47 = vand.u32 4294901760, %v3078_v11 }
 0x33e   : > { %v9322_v42 = vand.u32 4294901760, %v8691_v60  ;;  %v9323_v19 = vand.u32 4294901760, %v8694_v61  ;;  %6741 = vmatpush3.bf16.msra.mxu0 %v8489_v22  ;;  %v8711_v26 = vadd.f32 %v7356_v30, %v9377_v53  ;;  %v8714_v12 = vadd.f32 %v7354_v21, %v9379_v17 }
 0x33f   : > { %6144 = vmatprep.mubr.f32.mxu0 %v3243_v18  ;;  %v3253_v41 = vand.u32 4294901760, %v3252_v29  ;;  %v8717_v36 = vsub.f32 %v3075_v14, %v8703_v5  ;;  %v8720_v46 = vsub.f32 %v3078_v11, %v8705_v47  ;;  %6743 = vmatprep.subr.bf16.mxu0 %v8493_v9 }
 0x340   : > { %9378 = vst [vmem:[#allocation14_spill] sm:$0xff] %v8711_v26  ;;  %9380 = vst [vmem:[#allocation13_spill] sm:$0xff] %v8714_v12  ;;  %v3262_v22 = vsub.f32 %v8691_v60, %v9322_v42  ;;  %v3272_v53 = vsub.f32 %v8694_v61, %v9323_v19  ;;  %v3081_v21 = vsel %vm1760_vm1, %v8711_v26, 0  ;;  %v3084_v17 = vsel %vm1760_vm1, %v8714_v12, 0 }
 0x341   : > { %6145 = vmatmul.mubr.f32.gmra.mrb[40].mxu0 %v3253_v41  ;;  %v9328_v14 = vand.u32 4294901760, %v8717_v36  ;;  %v3291_v11 = vand.u32 4294901760, %v8720_v46  ;;  %v8735_v30 = vand.u32 4294901760, %v3081_v21  ;;  %v8737_v18 = vand.u32 4294901760, %v3084_v17 }
 0x342   : > { %v3263_v29 = vand.u32 4294901760, %v3262_v22  ;;  %v3273_v42 = vand.u32 4294901760, %v3272_v53 }
 0x343   : > { %v3282_v19 = vsub.f32 %v8717_v36, %v9328_v14  ;;  %v3292_v26 = vsub.f32 %v8720_v46, %v3291_v11  ;;  %v8746_v41 = vsub.f32 %v3081_v21, %v8735_v30  ;;  %v8749_v12 = vsub.f32 %v3084_v17, %v8737_v18 }
 0x344   : > { %6147 = vmatprep.mubr.f32.mxu0 %v3263_v29 }
 0x345   : > { %6148 = vmatmul.mubr.f32.gmra.mrb[42].mxu0 %v3273_v42  ;;  %v3283_v57 = vand.u32 4294901760, %v3282_v19  ;;  %v3301_v22 = vand.u32 4294901760, %v8746_v41  ;;  %v3311_v53 = vand.u32 4294901760, %v8749_v12  ;;  %v3293_v62 = vand.u32 4294901760, %v3292_v26 }
 0x346   : > { %v9387_v26 = vand.u32 4294901760, %v8579_v34  ;;  %v9388_v19 = vand.u32 4294901760, %v8463_v1  ;;  %v9389_v42 = vand.u32 4294901760, %v8465_v33  ;;  %v9395_v1 = vand.u32 4294901760, %v8626_v52 }
 0x347   : > { %6150 = vmatprep.mubr.f32.mxu0 %v3283_v57  ;;  %v3302_v14 = vsub.f32 %v8746_v41, %v3301_v22  ;;  %v3312_v21 = vsub.f32 %v8749_v12, %v3311_v53  ;;  %v9386_v57 = vand.u32 4294901760, %v8544_v10  ;;  %v9396_v33 = vand.u32 4294901760, %v8641_v59 }
 0x349   : > { %6151 = vmatmul.mubr.f32.gmra.mrb[44].mxu0 %v3293_v62  ;;  %v3303_v17 = vand.u32 4294901760, %v3302_v14  ;;  %v3313_v29 = vand.u32 4294901760, %v3312_v21  ;;  %v6782_v14 = vpack.c.bf16 %v9389_v42, %v9388_v19  ;;  %v9394_v21 = vand.u32 4294901760, %v8607_v56 }
 0x34b   : > { %6153 = vmatprep.mubr.f32.mxu0 %v3303_v17 }
 0x34d   : > { %6154 = vmatmul.mubr.f32.gmra.mrb[46].mxu0 %v3313_v29 }
 0x34e   : > { %6172 = vmatprep.mubr.f32.mxu0 %v8537_v23 }
 0x351   : > { %6173 = vmatmul.mubr.f32.vlgmr.msra.gmra.mrb[32].mxu0 %v8532_v45 }
 0x352   : > { %6175 = vmatprep.mubr.f32.mxu0 %v8561_v7  ;;  %6745 = vmatpush3.bf16.msra.mxu0 %v8493_v9  ;;  %v9381_v9 = vand.u32 4294901760, %v8428_v24  ;;  %v9383_v24 = vand.u32 4294901760, %v8551_v4 }
 0x353   : > { %6747 = vmatprep.subr.bf16.mxu0 %v8497_v54 }
 0x355   : > { %6176 = vmatmul.mubr.f32.gmra.mrb[34].mxu0 %v8558_v15 }
 0x356   : > { %6178 = vmatprep.mubr.f32.mxu0 %v8587_v28  ;;  %6749 = vmatpush3.bf16.msra.mxu0 %v8497_v54  ;;  %v9382_v54 = vand.u32 4294901760, %v8430_v25  ;;  %v9384_v25 = vand.u32 4294901760, %v8446_v2  ;;  %v9391_v2 = vand.u32 4294901760, %v8601_v37 }
 0x357   : > { %6751 = vmatprep.subr.bf16.mxu0 %v8501_v0 }
 0x359   : > { %6179 = vmatmul.mubr.f32.gmra.mrb[36].mxu0 %v8592_v16 }
 0x35a   : > { %6181 = vmatprep.mubr.f32.mxu0 %v8613_v58  ;;  %6753 = vmatpush3.bf16.msra.mxu0 %v8501_v0  ;;  %v6774_v0 = vpack.c.bf16 %v9382_v54, %v9381_v9 }
 0x35b   : > { %6755 = vmatprep.subr.bf16.mxu0 %v8505_v31 }
 0x35d   : > { %6182 = vmatmul.mubr.f32.gmra.mrb[38].mxu0 %v8628_v27 }
 0x35e   : > { %6184 = vmatprep.mubr.f32.mxu0 %v8643_v63  ;;  %6757 = vmatpush3.bf16.msra.mxu0 %v8505_v31  ;;  %v9385_v31 = vand.u32 4294901760, %v8448_v49  ;;  %v9392_v49 = vand.u32 4294901760, %v8475_v38  ;;  %v9398_v38 = vand.u32 4294901760, %v8672_v6 }
 0x35f   : > { %6759 = vmatprep.subr.bf16.mxu0 %v8370_v44 }
 0x360   : > { %v6778_v62 = vpack.c.bf16 %v9385_v31, %v9384_v25 }
 0x361   : > { %6185 = vmatmul.mubr.f32.gmra.mrb[40].mxu0 %v8661_v32 }
 0x362   : > { %6187 = vmatprep.mubr.f32.mxu0 %v8675_v8 }
 0x365   : > { %6188 = vmatmul.mubr.f32.gmra.mrb[42].mxu0 %v8677_v20 }
 0x366   : > { %6190 = vmatprep.mubr.f32.mxu0 %v8703_v5 }
 0x369   : > { %6191 = vmatmul.mubr.f32.gmra.mrb[44].mxu0 %v8705_v47 }
 0x36a   : > { %6193 = vmatprep.mubr.f32.mxu0 %v8735_v30 }
 0x36d   : > { %6194 = vmatmul.mubr.f32.gmra.mrb[46].mxu0 %v8737_v18 }
 0x36e   : > { %6212 = vmatprep.mubr.f32.mxu0 %v8551_v4  ;;  %v9390_v4 = vand.u32 4294901760, %v8570_v35 }
 0x371   : > { %6213 = vmatmul.mubr.f32.vlgmr.msra.gmra.mrb[32].mxu0 %v8544_v10  ;;  %v9393_v10 = vand.u32 4294901760, %v8477_v3  ;;  %v9399_v3 = vand.u32 4294901760, %v8691_v60 }
 0x372   : > { %6215 = vmatprep.mubr.f32.mxu0 %v8579_v34  ;;  %6761 = vmatpush3.bf16.msra.mxu0 %v8370_v44 }
 0x373   : > { %6763 = vmatprep.subr.bf16.mxu0 %v8398_v39  ;;  %v6786_v34 = vpack.c.bf16 %v9393_v10, %v9392_v49 }
 0x375   : > { %6216 = vmatmul.mubr.f32.gmra.mrb[34].mxu0 %v8570_v35  ;;  %v9397_v35 = vand.u32 4294901760, %v8659_v55 }
 0x376   : > { %6218 = vmatprep.mubr.f32.mxu0 %v8601_v37  ;;  %6765 = vmatpush3.bf16.msra.mxu0 %v8398_v39  ;;  %v9400_v37 = vand.u32 4294901760, %v8694_v61 }
 0x377   : > { %6767 = vmatprep.subr.bf16.mxu0 %v8408_v51 }
 0x379   : > { %6219 = vmatmul.mubr.f32.gmra.mrb[36].mxu0 %v8607_v56  ;;  %v9401_v56 = vand.u32 4294901760, %v8717_v36 }
 0x37a   : > { %6221 = vmatprep.mubr.f32.mxu0 %v8626_v52  ;;  %6769 = vmatpush3.bf16.msra.mxu0 %v8408_v51 }
 0x37b   : > { %6771 = vmatprep.subr.bf16.mxu0 %v8418_v43 }
 0x37d   : > { %6222 = vmatmul.mubr.f32.gmra.mrb[38].mxu0 %v8641_v59 }
 0x37e   : > { %6224 = vmatprep.mubr.f32.mxu0 %v8659_v55  ;;  %6773 = vmatpush3.bf16.msra.mxu0 %v8418_v43 }
 0x37f   : > { %6775 = vmatprep.subr.bf16.mxu0 %v6774_v0 }
 0x381   : > { %6225 = vmatmul.mubr.f32.gmra.mrb[40].mxu0 %v8672_v6 }
 0x382   : > { %6227 = vmatprep.mubr.f32.mxu0 %v8691_v60 }
 0x385   : > { %6228 = vmatmul.mubr.f32.gmra.mrb[42].mxu0 %v8694_v61 }
 0x386   : > { %6230 = vmatprep.mubr.f32.mxu0 %v8717_v36 }
 0x389   : > { %6231 = vmatmul.mubr.f32.gmra.mrb[44].mxu0 %v8720_v46 }
 0x38a   : > { %6233 = vmatprep.mubr.f32.mxu0 %v8746_v41 }
 0x38d   : > { %6234 = vmatmul.mubr.f32.gmra.mrb[46].mxu0 %v8749_v12 }
 0x38e   : > { %6252 = vmatprep.mubr.f32.mxu0 %v9383_v24 }
 0x391   : > { %6253 = vmatmul.mubr.f32.vlgmr.msra.gmra.mrb[32].mxu0 %v9386_v57 }
 0x392   : > { %6255 = vmatprep.mubr.f32.mxu0 %v9387_v26  ;;  %6777 = vmatpush3.bf16.msra.mxu0 %v6774_v0  ;;  %v9402_v26 = vld [vmem:[#allocation15_spill] sm:$0xff] }
 0x393   : > { %6779 = vmatprep.subr.bf16.mxu0 %v6778_v62 }
 0x395   : > { %6256 = vmatmul.mubr.f32.gmra.mrb[34].mxu0 %v9390_v4 }
 0x396   : > { %6258 = vmatprep.mubr.f32.mxu0 %v9391_v2  ;;  %6781 = vmatpush3.bf16.msra.mxu0 %v6778_v62  ;;  %v9403_v2 = vld [vmem:[#allocation16_spill] sm:$0xff] }
 0x397   : > { %6783 = vmatprep.subr.bf16.mxu0 %v6782_v14 }
 0x399   : > { %6259 = vmatmul.mubr.f32.gmra.mrb[36].mxu0 %v9394_v21 }
 0x39a   : > { %6261 = vmatprep.mubr.f32.mxu0 %v9395_v1  ;;  %6785 = vmatpush3.bf16.msra.mxu0 %v6782_v14 }
 0x39b   : > { %6787 = vmatprep.subr.bf16.mxu0 %v6786_v34 }
 0x39d   : > { %6262 = vmatmul.mubr.f32.gmra.mrb[38].mxu0 %v9396_v33 }
 0x39e   : > { %6264 = vmatprep.mubr.f32.mxu0 %v9397_v35  ;;  %6789 = vmatpush3.bf16.msra.mxu0 %v6786_v34 }
 0x39f   : > { %6791 = vmatprep.subr.bf16.mxu0 %v8370_v44 }
 0x3a1   : > { %6265 = vmatmul.mubr.f32.gmra.mrb[40].mxu0 %v9398_v38 }
 0x3a2   : > { %6267 = vmatprep.mubr.f32.mxu0 %v9399_v3 }
 0x3a5   : > { %6268 = vmatmul.mubr.f32.gmra.mrb[42].mxu0 %v9400_v37 }
 0x3a6   : > { %6270 = vmatprep.mubr.f32.mxu0 %v9401_v56 }
 0x3a9   : > { %6271 = vmatmul.mubr.f32.gmra.mrb[44].mxu0 %v3291_v11 }
 0x3aa   : > { %6273 = vmatprep.mubr.f32.mxu0 %v3301_v22 }
 0x3ad   : > { %6274 = vmatmul.mubr.f32.gmra.mrb[46].mxu0 %v3311_v53 }
 0x3ae   : > { %6292 = vmatprep.mubr.f32.mxu0 %v8537_v23 }
 0x3b1   : > { %6293 = vmatmul.mubr.f32.vlgmr.msra.gmra.mrb[32].mxu0 %v8532_v45 }
 0x3b2   : > { %6295 = vmatprep.mubr.f32.mxu0 %v8561_v7  ;;  %6793 = vmatpush3.bf16.msra.mxu0 %v8370_v44  ;;  %v7466_v44 = vmov 0.0|0.0  }
 0x3b3   : > { %6795 = vmatprep.subr.bf16.mxu0 %v8398_v39  ;;  %6830 = vmatprep.subr.bf16.mxu1 %v7466_v44 }
 0x3b5   : > { %6296 = vmatmul.mubr.f32.gmra.mrb[34].mxu0 %v8558_v15 }
 0x3b6   : > { %6298 = vmatprep.mubr.f32.mxu0 %v8587_v28  ;;  %6797 = vmatpush3.bf16.msra.mxu0 %v8398_v39  ;;  %v7468_v39 = vmov 0.0  }
 0x3b7   : > { %6799 = vmatprep.subr.bf16.mxu0 %v8408_v51  ;;  %6423 = vmatprep.mubr.msk.f32.mxu1 %vm7467_vm2, %v7468_v39 }
 0x3b9   : > { %6299 = vmatmul.mubr.f32.gmra.mrb[36].mxu0 %v8592_v16 }
 0x3ba   : > { %6301 = vmatprep.mubr.f32.mxu0 %v8613_v58  ;;  %6801 = vmatpush3.bf16.msra.mxu0 %v8408_v51  ;;  %v8904_v51 = vld [vmem:[%s511_s29] ss:$0 sm:$0xff] }
 0x3bb   : > { %6803 = vmatprep.subr.bf16.mxu0 %v8418_v43 }
 0x3bd   : > { %6302 = vmatmul.mubr.f32.gmra.mrb[38].mxu0 %v8628_v27 }
 0x3be   : > { %6304 = vmatprep.mubr.f32.mxu0 %v8643_v63  ;;  %6805 = vmatpush3.bf16.msra.mxu0 %v8418_v43 }
 0x3bf   : > { %6806 = vmatprep.subr.bf16.mxu0 %v7466_v44 }
 0x3c1   : > { %6305 = vmatmul.mubr.f32.gmra.mrb[40].mxu0 %v8661_v32 }
 0x3c2   : > { %6307 = vmatprep.mubr.f32.mxu0 %v8675_v8 }
 0x3c5   : > { %6308 = vmatmul.mubr.f32.gmra.mrb[42].mxu0 %v8677_v20 }
 0x3c6   : > { %6310 = vmatprep.mubr.f32.mxu0 %v8703_v5 }
 0x3c9   : > { %6311 = vmatmul.mubr.f32.gmra.mrb[44].mxu0 %v8705_v47 }
 0x3ca   : > { %6313 = vmatprep.mubr.f32.mxu0 %v8735_v30 }
 0x3cd   : > { %6314 = vmatmul.mubr.f32.gmra.mrb[46].mxu0 %v8737_v18 }
 0x3ce   : > { %6332 = vmatprep.mubr.f32.mxu0 %v8537_v23 }
 0x3d1   : > { %6333 = vmatmul.mubr.f32.vlgmr.msra.gmra.mrb[32].mxu0 %v8532_v45 }
 0x3d2   : > { %6335 = vmatprep.mubr.f32.mxu0 %v8561_v7 }
 0x3d5   : > { %6336 = vmatmul.mubr.f32.gmra.mrb[34].mxu0 %v8558_v15 }
 0x3d6   : > { %6338 = vmatprep.mubr.f32.mxu0 %v8587_v28 }
 0x3d9   : > { %6339 = vmatmul.mubr.f32.gmra.mrb[36].mxu0 %v8592_v16 }
 0x3da   : > { %6341 = vmatprep.mubr.f32.mxu0 %v8613_v58 }
 0x3dd   : > { %6342 = vmatmul.mubr.f32.gmra.mrb[38].mxu0 %v8628_v27 }
 0x3de   : > { %6344 = vmatprep.mubr.f32.mxu0 %v8643_v63 }
 0x3e1   : > { %6345 = vmatmul.mubr.f32.gmra.mrb[40].mxu0 %v8661_v32 }
 0x3e2   : > { %6347 = vmatprep.mubr.f32.mxu0 %v8675_v8 }
 0x3e5   : > { %6348 = vmatmul.mubr.f32.gmra.mrb[42].mxu0 %v8677_v20 }
 0x3e6   : > { %6350 = vmatprep.mubr.f32.mxu0 %v8703_v5 }
 0x3e9   : > { %6351 = vmatmul.mubr.f32.gmra.mrb[44].mxu0 %v8705_v47 }
 0x3ea   : > { %6353 = vmatprep.mubr.f32.mxu0 %v8735_v30 }
 0x3ed   : > { %6354 = vmatmul.mubr.f32.gmra.mrb[46].mxu0 %v8737_v18 }
 0x3ee   : > { %6388 = vmatprep.mubr.msk.f32.mxu0 %vm7467_vm2, %v7468_v39 }
 0x4a4   : > { %v6334_v43 = vpop.f32.mrb[32].mxu0 }
 0x4a5   : > { %v6998_v32 = vadd.f32 %v6334_v43, %v8904_v51  ;;  %v4174_v45 = vpop.f32.mrb[33].mxu0 }
 0x4a6   : > { %v6999_v23 = vadd.f32 %v8904_v51, %v4174_v45 }
 0x4a7   : > { %7357 = vtanh.f32 %v6998_v32 }
 0x4a8   : > { %7359 = vtanh.f32 %v6999_v23  ;;  %v6337_v15 = vpop.f32.mrb[34].mxu0  ;;  %v9404_v23 = vld [vmem:[#allocation18_spill] sm:$0xff] }
 0x4a9   : > { %v7000_v20 = vadd.f32 %v6337_v15, %v8904_v51  ;;  %v4186_v7 = vpop.f32.mrb[35].mxu0 }
 0x4aa   : > { %v7001_v28 = vadd.f32 %v8904_v51, %v4186_v7 }
 0x4ab   : > { %7361 = vtanh.f32 %v7000_v20 }
 0x4ac   : > { %7363 = vtanh.f32 %v7001_v28  ;;  %v6340_v16 = vpop.f32.mrb[36].mxu0 }
 0x4ad   : > { %v7002_v46 = vadd.f32 %v6340_v16, %v8904_v51  ;;  %v4198_v58 = vpop.f32.mrb[37].mxu0  ;;  %v9405_v16 = vld [vmem:[#allocation17_spill] sm:$0xff] }
 0x4ae   : > { %v7003_v60 = vadd.f32 %v8904_v51, %v4198_v58 }
 0x4af   : > { %7365 = vtanh.f32 %v7002_v46 }
 0x4b0   : > { %7367 = vtanh.f32 %v7003_v60  ;;  %v6343_v52 = vpop.f32.mrb[38].mxu0 }
 0x4b1   : > { %v7358_v27 = vpop.eup %7357  ;;  %v7004_v5 = vadd.f32 %v6343_v52, %v8904_v51  ;;  %v4210_v59 = vpop.f32.mrb[39].mxu0 }
 0x4b2   : > { %v7360_v63 = vpop.eup %7359  ;;  %v4285_v55 = vadd.f32 %v7358_v27, %v8520_v13  ;;  %v7005_v6 = vadd.f32 %v8904_v51, %v4210_v59 }
 0x4b3   : > { %v4284_v8 = vadd.f32 %v7360_v63, %v8525_v40  ;;  %7369 = vtanh.f32 %v7004_v5 }
 0x4b4   : > { %7371 = vtanh.f32 %v7005_v6  ;;  %v6346_v36 = vpop.f32.mrb[40].mxu0  ;;  %v4318_v61 = vsel %vm1760_vm1, %v4285_v55, 0 }
 0x4b5   : > { %v7362_v47 = vpop.eup %7361  ;;  %v7006_v12 = vadd.f32 %v6346_v36, %v8904_v51  ;;  %v4222_v11 = vpop.f32.mrb[41].mxu0  ;;  %v4315_v30 = vsel %vm1760_vm1, %v4284_v8, 0  ;;  %v4366_v18 = vand.u32 4294901760, %v4318_v61 }
 0x4b6   : > { %v7364_v41 = vpop.eup %7363  ;;  %v4287_v22 = vadd.f32 %v7362_v47, %v8540_v50  ;;  %v7007_v13 = vadd.f32 %v8904_v51, %v4222_v11  ;;  %v4363_v53 = vand.u32 4294901760, %v4315_v30 }
 0x4b7   : > { %v4286_v40 = vadd.f32 %v7364_v41, %v8547_v48  ;;  %7373 = vtanh.f32 %v7006_v12  ;;  %v8922_v17 = vsub.f32 %v4318_v61, %v4366_v18  ;;  %v9406_v12 = vld [vmem:[#allocation8_spill] sm:$0xff] }
 0x4b8   : > { %7375 = vtanh.f32 %v7007_v13  ;;  %v6349_v29 = vpop.f32.mrb[42].mxu0  ;;  %v8924_v9 = vpack.c.bf16 %v4366_v18, %v4363_v53  ;;  %v8926_v54 = vsub.f32 %v4315_v30, %v4363_v53  ;;  %v4324_v0 = vsel %vm1760_vm1, %v4287_v22, 0  ;;  %v9407_v22 = vld [vmem:[#allocation19_spill] sm:$0xff] }
 0x4b9   : > { %v7366_v24 = vpop.eup %7365  ;;  %v7008_v25 = vadd.f32 %v6349_v29, %v8904_v51  ;;  %v4234_v50 = vpop.f32.mrb[43].mxu0  ;;  %v4321_v31 = vsel %vm1760_vm1, %v4286_v40, 0  ;;  %v4372_v62 = vand.u32 4294901760, %v4324_v0  ;;  %v4463_v48 = vand.u32 4294901760, %v8922_v17 }
 0x4ba   : > { %v7368_v57 = vpop.eup %7367  ;;  %v4289_v19 = vadd.f32 %v7366_v24, %v9402_v26  ;;  %v7009_v42 = vadd.f32 %v8904_v51, %v4234_v50  ;;  %6808 = vmatpush3.bf16.xpose.msra.mxu0 %v8924_v9  ;;  %v4369_v14 = vand.u32 4294901760, %v4321_v31  ;;  %v4456_v4 = vand.u32 4294901760, %v8926_v54  ;;  %v9408_v26 = vld [vmem:[#allocation9_spill] sm:$0xff] }
 0x4bb   : > { %v4288_v49 = vadd.f32 %v7368_v57, %v9403_v2  ;;  %7377 = vtanh.f32 %v7008_v25  ;;  %6809 = vmatprep.subr.bf16.mxu0 %v7466_v44  ;;  %v8938_v10 = vsub.f32 %v4324_v0, %v4372_v62  ;;  %v4464_v34 = vsub.f32 %v8922_v17, %v4463_v48 }
 0x4bc   : > { %7379 = vtanh.f32 %v7009_v42  ;;  %v6352_v21 = vpop.f32.mrb[44].mxu0  ;;  %v8943_v1 = vpack.c.bf16 %v4372_v62, %v4369_v14  ;;  %v8945_v33 = vsub.f32 %v4321_v31, %v4369_v14  ;;  %v4457_v35 = vsub.f32 %v8926_v54, %v4456_v4 }
 0x4bd   : > { %v7370_v38 = vpop.eup %7369  ;;  %v7010_v3 = vadd.f32 %v6352_v21, %v8904_v51  ;;  %v4246_v37 = vpop.f32.mrb[45].mxu0  ;;  %v4465_v56 = vand.u32 4294901760, %v4464_v34  ;;  %v4327_v43 = vsel %vm1760_vm1, %v4288_v49, 0  ;;  %v4330_v32 = vsel %vm1760_vm1, %v4289_v19, 0  ;;  %v9409_v49 = vld [vmem:[#allocation10_spill] sm:$0xff] }
 0x4be   : > { %v7372_v45 = vpop.eup %7371  ;;  %v4291_v15 = vadd.f32 %v7370_v38, %v9404_v23  ;;  %v7011_v20 = vadd.f32 %v8904_v51, %v4246_v37  ;;  %v4458_v7 = vand.u32 4294901760, %v4457_v35  ;;  %v4375_v28 = vand.u32 4294901760, %v4327_v43 }
 0x4bf   : > { %v4290_v46 = vadd.f32 %v7372_v45, %v9405_v16  ;;  %7381 = vtanh.f32 %v7010_v3  ;;  %v4378_v58 = vand.u32 4294901760, %v4330_v32  ;;  %v4470_v60 = vand.u32 4294901760, %v8945_v33 }
 0x4c0   : > { %7383 = vtanh.f32 %v7011_v20  ;;  %v6355_v52 = vpop.f32.mrb[46].mxu0  ;;  %v6831_v27 = vpack.c.bf16 %v4465_v56, %v4458_v7  ;;  %v8957_v5 = vsub.f32 %v4327_v43, %v4375_v28  ;;  %v4477_v59 = vand.u32 4294901760, %v8938_v10 }
 0x4c1   : > { %v7374_v63 = vpop.eup %7373  ;;  %v7012_v55 = vadd.f32 %v6355_v52, %v8904_v51  ;;  %v4258_v6 = vpop.f32.mrb[47].mxu0  ;;  %v8961_v8 = vpack.c.bf16 %v4378_v58, %v4375_v28  ;;  %v8963_v36 = vsub.f32 %v4330_v32, %v4378_v58  ;;  %v4471_v61 = vsub.f32 %v8945_v33, %v4470_v60  ;;  %v9410_v28 = vld [vmem:[#allocation11_spill] sm:$0xff] }
 0x4c2   : > { %v7376_v47 = vpop.eup %7375  ;;  %v4293_v11 = vadd.f32 %v7374_v63, %v9406_v12  ;;  %v7013_v30 = vadd.f32 %v8904_v51, %v4258_v6  ;;  %6811 = vmatpush3.bf16.xpose.msra.mxu0 %v8943_v1  ;;  %6832 = vmatpush3.bf16.xpose.msra.mxu1 %v6831_v27  ;;  %v4478_v18 = vsub.f32 %v8938_v10, %v4477_v59  ;;  %v4333_v41 = vsel %vm1760_vm1, %v4290_v46, 0  ;;  %v9411_v27 = vld [vmem:[#allocation12_spill] sm:$0xff] }
 0x4c3   : > { %v4292_v13 = vadd.f32 %v7376_v47, %v9407_v22  ;;  %7385 = vtanh.f32 %v7012_v55  ;;  %6812 = vmatprep.subr.bf16.mxu0 %v7466_v44  ;;  %6833 = vmatprep.subr.bf16.mxu1 %v7466_v44  ;;  %v4472_v53 = vand.u32 4294901760, %v4471_v61  ;;  %v4336_v40 = vsel %vm1760_vm1, %v4291_v15, 0 }
 0x4c4   : > { %7387 = vtanh.f32 %v7013_v30  ;;  %v4479_v51 = vand.u32 4294901760, %v4478_v18  ;;  %v4381_v29 = vand.u32 4294901760, %v4333_v41  ;;  %v4384_v0 = vand.u32 4294901760, %v4336_v40 }
 0x4c5   : > { %v7378_v24 = vpop.eup %7377  ;;  %v4484_v25 = vand.u32 4294901760, %v8957_v5  ;;  %v4491_v50 = vand.u32 4294901760, %v8963_v36  ;;  %v4339_v31 = vsel %vm1760_vm1, %v4292_v13, 0  ;;  %v4342_v62 = vsel %vm1760_vm1, %v4293_v11, 0 }
 0x4c6   : > { %v7380_v57 = vpop.eup %7379  ;;  %v4295_v19 = vadd.f32 %v7378_v24, %v9408_v26  ;;  %v6834_v42 = vpack.c.bf16 %v4479_v51, %v4472_v53  ;;  %v8984_v14 = vpack.c.bf16 %v4384_v0, %v4381_v29  ;;  %v8986_v2 = vsub.f32 %v4333_v41, %v4381_v29  ;;  %v9412_v51 = vld [vmem:[#allocation13_spill] sm:$0xff] }
 0x4c7   : > { %v4294_v34 = vadd.f32 %v7380_v57, %v9409_v49  ;;  %v8989_v21 = vsub.f32 %v4336_v40, %v4384_v0  ;;  %v4485_v35 = vsub.f32 %v8957_v5, %v4484_v25  ;;  %v4492_v38 = vsub.f32 %v8963_v36, %v4491_v50 }
 0x4c8   : > { %v4387_v3 = vand.u32 4294901760, %v4339_v31  ;;  %v4390_v37 = vand.u32 4294901760, %v4342_v62  ;;  %v4498_v56 = vand.u32 4294901760, %v8986_v2  ;;  %v4348_v43 = vsel %vm1760_vm1, %v4295_v19, 0 }
 0x4c9   : > { %v7382_v32 = vpop.eup %7381  ;;  %v4486_v45 = vand.u32 4294901760, %v4485_v35  ;;  %v4493_v23 = vand.u32 4294901760, %v4492_v38  ;;  %v4505_v15 = vand.u32 4294901760, %v8989_v21  ;;  %v4345_v20 = vsel %vm1760_vm1, %v4294_v34, 0 }
 0x4ca   : > { %v7384_v7 = vpop.eup %7383  ;;  %v4297_v16 = vadd.f32 %v7382_v32, %v9410_v28  ;;  %6814 = vmatpush3.bf16.xpose.msra.mxu0 %v8961_v8  ;;  %6835 = vmatpush3.bf16.xpose.msra.mxu1 %v6834_v42  ;;  %v9003_v46 = vpack.c.bf16 %v4390_v37, %v4387_v3  ;;  %v9005_v58 = vsub.f32 %v4339_v31, %v4387_v3  ;;  %v4393_v52 = vand.u32 4294901760, %v4345_v20 }
 0x4cb   : > { %v4296_v63 = vadd.f32 %v7384_v7, %v9411_v27  ;;  %6815 = vmatprep.subr.bf16.mxu0 %v7466_v44  ;;  %6836 = vmatprep.subr.bf16.mxu1 %v7466_v44  ;;  %v6837_v55 = vpack.c.bf16 %v4493_v23, %v4486_v45  ;;  %v9010_v6 = vsub.f32 %v4342_v62, %v4390_v37  ;;  %v4396_v61 = vand.u32 4294901760, %v4348_v43  ;;  %v9413_v62 = vld [vmem:[#allocation14_spill] sm:$0xff] }
 0x4cc   : > { %v4499_v47 = vsub.f32 %v8986_v2, %v4498_v56  ;;  %v4506_v12 = vsub.f32 %v8989_v21, %v4505_v15  ;;  %v9018_v11 = vsub.f32 %v4345_v20, %v4393_v52  ;;  %v4512_v30 = vand.u32 4294901760, %v9005_v58 }
 0x4cd   : > { %v7386_v18 = vpop.eup %7385  ;;  %v9021_v41 = vpack.c.bf16 %v4396_v61, %v4393_v52  ;;  %v9023_v22 = vsub.f32 %v4348_v43, %v4396_v61  ;;  %v4519_v13 = vand.u32 4294901760, %v9010_v6  ;;  %v4351_v53 = vsel %vm1760_vm1, %v4296_v63, 0 }
 0x4ce   : > { %v7388_v40 = vpop.eup %7387  ;;  %v4299_v29 = vadd.f32 %v7386_v18, %v9412_v51  ;;  %v4500_v0 = vand.u32 4294901760, %v4499_v47  ;;  %v4507_v24 = vand.u32 4294901760, %v4506_v12  ;;  %v4513_v31 = vsub.f32 %v9005_v58, %v4512_v30 }
 0x4cf   : > { %v4298_v57 = vadd.f32 %v7388_v40, %v9413_v62  ;;  %v4520_v26 = vsub.f32 %v9010_v6, %v4519_v13  ;;  %v4354_v19 = vsel %vm1760_vm1, %v4297_v16, 0  ;;  %v4399_v42 = vand.u32 4294901760, %v4351_v53 }
 0x4d0   : > { %v6840_v49 = vpack.c.bf16 %v4507_v24, %v4500_v0  ;;  %v4514_v34 = vand.u32 4294901760, %v4513_v31  ;;  %v4402_v35 = vand.u32 4294901760, %v4354_v19  ;;  %v4526_v38 = vand.u32 4294901760, %v9018_v11 }
 0x4d1   : > { %v4521_v3 = vand.u32 4294901760, %v4520_v26  ;;  %v9037_v37 = vsub.f32 %v4351_v53, %v4399_v42  ;;  %v4533_v43 = vand.u32 4294901760, %v9023_v22  ;;  %v4357_v32 = vsel %vm1760_vm1, %v4298_v57, 0 }
 0x4d2   : > { %6817 = vmatpush3.bf16.xpose.msra.mxu0 %v8984_v14  ;;  %6838 = vmatpush3.bf16.xpose.msra.mxu1 %v6837_v55  ;;  %v9042_v45 = vpack.c.bf16 %v4402_v35, %v4399_v42  ;;  %v9044_v23 = vsub.f32 %v4354_v19, %v4402_v35  ;;  %v4527_v20 = vsub.f32 %v9018_v11, %v4526_v38  ;;  %v4360_v7 = vsel %vm1760_vm1, %v4299_v29, 0 }
 0x4d3   : > { %6818 = vmatprep.subr.bf16.mxu0 %v7466_v44  ;;  %6839 = vmatprep.subr.bf16.mxu1 %v7466_v44  ;;  %v6843_v28 = vpack.c.bf16 %v4521_v3, %v4514_v34  ;;  %v4534_v16 = vsub.f32 %v9023_v22, %v4533_v43  ;;  %v4405_v52 = vand.u32 4294901760, %v4357_v32  ;;  %v4408_v27 = vand.u32 4294901760, %v4360_v7 }
 0x4d4   : > { %v4528_v63 = vand.u32 4294901760, %v4527_v20  ;;  %v4540_v55 = vand.u32 4294901760, %v9037_v37  ;;  %v4547_v61 = vand.u32 4294901760, %v9044_v23  ;;  %v6855_v47 = vpack.c.bf16 %v8922_v17, %v8926_v54 }
 0x4d5   : > { %v4535_v12 = vand.u32 4294901760, %v4534_v16  ;;  %v9055_v18 = vpack.c.bf16 %v4408_v27, %v4405_v52  ;;  %v9057_v53 = vsub.f32 %v4357_v32, %v4405_v52  ;;  %v9059_v40 = vsub.f32 %v4360_v7, %v4408_v27 }
 0x4d6   : > { %v4541_v51 = vsub.f32 %v9037_v37, %v4540_v55  ;;  %v4548_v29 = vsub.f32 %v9044_v23, %v4547_v61  ;;  %v6858_v0 = vpack.c.bf16 %v8938_v10, %v8945_v33  ;;  %v6861_v24 = vpack.c.bf16 %v8963_v36, %v8957_v5  ;;  %v4300_v5 = vld [vmem:[%s516_s17] sm:$0x1]  ;;  %s7399_s17 = scalar_lea.vmem %s9214_s27, 16 }
 0x4d7   : > { %v6846_v31 = vpack.c.bf16 %v4535_v12, %v4528_v63  ;;  %v4554_v62 = vand.u32 4294901760, %v9057_v53  ;;  %v4561_v57 = vand.u32 4294901760, %v9059_v40  ;;  %v6864_v26 = vpack.c.bf16 %v8989_v21, %v8986_v2  ;;  %p7400_p10 = scmp.ne.s32.totalorder %s9214_s27, %s7399_s17  ;;  %p7407_p0 = scmp.lt.s32.totalorder %s7405_s20, %s7399_s17 }
 0x4d8   : > { %v4542_v19 = vand.u32 4294901760, %v4541_v51  ;;  %v4549_v42 = vand.u32 4294901760, %v4548_v29  ;;  %v6867_v34 = vpack.c.bf16 %v9010_v6, %v9005_v58  ;;  %v6870_v35 = vpack.c.bf16 %v9023_v22, %v9018_v11 }
 0x4d9   : > { %v4555_v3 = vsub.f32 %v9057_v53, %v4554_v62  ;;  %v4562_v32 = vsub.f32 %v9059_v40, %v4561_v57  ;;  %v6873_v20 = vpack.c.bf16 %v9044_v23, %v9037_v37  ;;  %v6876_v7 = vpack.c.bf16 %v9059_v40, %v9057_v53  ;;  %p7401_p11 = pnand %p7400_p10, %p7576_p8  ;;  %p7408_p1 = por %p7407_p0, %p7406_p13 }
 0x4da   : > { %6820 = vmatpush3.bf16.xpose.msra.mxu0 %v9003_v46  ;;  %6841 = vmatpush3.bf16.xpose.msra.mxu1 %v6840_v49  ;;  %v6849_v16 = vpack.c.bf16 %v4549_v42, %v4542_v19  ;;  %v9086_v11 = vpack.c.bf16 %v4463_v48, %v4456_v4  ;;  %v9094_v23 = vpack.c.bf16 %v4477_v59, %v4470_v60  ;;  %v4312_v59 = vsel %vm1760_vm1, %v4300_v5, 0 }
 0x4db   : > { %6821 = vmatprep.subr.bf16.mxu0 %v7466_v44  ;;  %6842 = vmatprep.subr.bf16.mxu1 %v7466_v44  ;;  %v4556_v22 = vand.u32 4294901760, %v4555_v3  ;;  %v4563_v37 = vand.u32 4294901760, %v4562_v32  ;;  %v9100_v54 = vpack.c.bf16 %v4491_v50, %v4484_v25  ;;  %v9106_v17 = vpack.c.bf16 %v4505_v15, %v4498_v56  ;;  %v4301_v15 = vld [vmem:[%s521_s21] sm:$0x1]  ;;  %p7402_p12 = pneg %p7401_p11 }
 0x4dc   : > { %v9112_v48 = vpack.c.bf16 %v4519_v13, %v4512_v30  ;;  %v9114_v4 = vpack.c.bf16 %v4533_v43, %v4526_v38  ;;  %v9116_v10 = vpack.c.bf16 %v4547_v61, %v4540_v55  ;;  %v9118_v60 = vpack.c.bf16 %v4561_v57, %v4554_v62 }
 0x4dd   : > { %v6852_v33 = vpack.c.bf16 %v4563_v37, %v4556_v22  ;;  %v9133_v36 = vand.u32 4294901760, %v4312_v59  ;;  %v7469_v56 = vmov 0   ;;  %p7409_p2 = pnand %p7408_p1, %p7402_p12 }
 0x4de   : > { %7292 = vset.pattern.permute.xlu0 %v7469_v56 }
 0x4df   : > { %v4444_v25 = vsub.f32 %v4312_v59, %v9133_v36  ;;  %4304 = vperm.xlu0 %7292, %v4301_v15  }
 0x4e1   : > { %v4445_v50 = vand.u32 4294901760, %v4444_v25 }
 0x4e2   : > { %6823 = vmatpush3.bf16.xpose.msra.mxu0 %v9021_v41  ;;  %6844 = vmatpush3.bf16.xpose.msra.mxu1 %v6843_v28 }
 0x4e3   : > { %6824 = vmatprep.subr.bf16.mxu0 %v7466_v44  ;;  %6845 = vmatprep.subr.bf16.mxu1 %v7466_v44  ;;  %v4446_v2 = vsub.f32 %v4444_v25, %v4445_v50 }
 0x4e5   : > { %v4447_v21 = vand.u32 4294901760, %v4446_v2 }
 0x4ea   : > { %6826 = vmatpush3.bf16.xpose.msra.mxu0 %v9042_v45  ;;  %6847 = vmatpush3.bf16.xpose.msra.mxu1 %v6846_v31 }
 0x4eb   : > { %6827 = vmatprep.subr.bf16.mxu0 %v7466_v44  ;;  %6848 = vmatprep.subr.bf16.mxu1 %v7466_v44 }
 0x4f2   : > { %6829 = vmatpush3.bf16.xpose.msra.mxu0 %v9055_v18  ;;  %6850 = vmatpush3.bf16.xpose.msra.mxu1 %v6849_v16 }
 0x4f3   : > { %6851 = vmatprep.subr.bf16.mxu1 %v7466_v44 }
 0x4f9   : > { %6389 = vmatmul.mubr.f32.vlgmr.msra.gmra.mrb[48].mxu0 %v4447_v21 }
 0x4fa   : > { %6853 = vmatpush3.bf16.xpose.msra.mxu1 %v6852_v33 }
 0x4fb   : > { %6854 = vmatprep.subr.bf16.mxu1 %v7466_v44 }
 0x501   : > { %6424 = vmatmul.mubr.f32.vlgmr.msra.gmra.mrb[16].mxu1 %v9133_v36 }
 0x502   : > { %6856 = vmatpush3.bf16.xpose.msra.mxu1 %v6855_v47  ;;  %6458 = vmatprep.mubr.msk.f32.mxu1 %vm7467_vm2, %v7468_v39 }
 0x503   : > { %6857 = vmatprep.subr.bf16.mxu1 %v7466_v44 }
 0x50a   : > { %6859 = vmatpush3.bf16.xpose.msra.mxu1 %v6858_v0 }
 0x50b   : > { %6860 = vmatprep.subr.bf16.mxu1 %v7466_v44 }
 0x512   : > { %6862 = vmatpush3.bf16.xpose.msra.mxu1 %v6861_v24 }
 0x513   : > { %6863 = vmatprep.subr.bf16.mxu1 %v7466_v44 }
 0x51a   : > { %6865 = vmatpush3.bf16.xpose.msra.mxu1 %v6864_v26 }
 0x51b   : > { %6866 = vmatprep.subr.bf16.mxu1 %v7466_v44 }
 0x522   : > { %6868 = vmatpush3.bf16.xpose.msra.mxu1 %v6867_v34 }
 0x523   : > { %6869 = vmatprep.subr.bf16.mxu1 %v7466_v44 }
 0x52a   : > { %6871 = vmatpush3.bf16.xpose.msra.mxu1 %v6870_v35 }
 0x52b   : > { %6872 = vmatprep.subr.bf16.mxu1 %v7466_v44 }
 0x532   : > { %6874 = vmatpush3.bf16.xpose.msra.mxu1 %v6873_v20 }
 0x533   : > { %6875 = vmatprep.subr.bf16.mxu1 %v7466_v44 }
 0x53a   : > { %6877 = vmatpush3.bf16.xpose.msra.mxu1 %v6876_v7 }
 0x53b   : > { %6878 = vmatprep.subr.bf16.mxu1 %v7466_v44 }
 0x541   : > { %6459 = vmatmul.mubr.f32.vlgmr.msra.gmra.mrb[16].mxu1 %v4444_v25 }
 0x542   : > { %6880 = vmatpush3.bf16.xpose.msra.mxu1 %v8924_v9  ;;  %6493 = vmatprep.mubr.msk.f32.mxu1 %vm7467_vm2, %v7468_v39 }
 0x543   : > { %6881 = vmatprep.subr.bf16.mxu1 %v7466_v44 }
 0x54a   : > { %6883 = vmatpush3.bf16.xpose.msra.mxu1 %v8943_v1 }
 0x54b   : > { %6884 = vmatprep.subr.bf16.mxu1 %v7466_v44 }
 0x552   : > { %6886 = vmatpush3.bf16.xpose.msra.mxu1 %v8961_v8 }
 0x553   : > { %6887 = vmatprep.subr.bf16.mxu1 %v7466_v44 }
 0x55a   : > { %6889 = vmatpush3.bf16.xpose.msra.mxu1 %v8984_v14 }
 0x55b   : > { %6890 = vmatprep.subr.bf16.mxu1 %v7466_v44 }
 0x562   : > { %6892 = vmatpush3.bf16.xpose.msra.mxu1 %v9003_v46 }
 0x563   : > { %6893 = vmatprep.subr.bf16.mxu1 %v7466_v44 }
 0x56a   : > { %6895 = vmatpush3.bf16.xpose.msra.mxu1 %v9021_v41 }
 0x56b   : > { %6896 = vmatprep.subr.bf16.mxu1 %v7466_v44 }
 0x572   : > { %6898 = vmatpush3.bf16.xpose.msra.mxu1 %v9042_v45 }
 0x573   : > { %6899 = vmatprep.subr.bf16.mxu1 %v7466_v44 }
 0x57a   : > { %6901 = vmatpush3.bf16.xpose.msra.mxu1 %v9055_v18 }
 0x57b   : > { %6902 = vmatprep.subr.bf16.mxu1 %v7466_v44 }
 0x581   : > { %6494 = vmatmul.mubr.f32.vlgmr.msra.gmra.mrb[16].mxu1 %v4445_v50 }
 0x582   : > { %6904 = vmatpush3.bf16.xpose.msra.mxu1 %v9086_v11  ;;  %6528 = vmatprep.mubr.msk.f32.mxu1 %vm7467_vm2, %v7468_v39 }
 0x583   : > { %6905 = vmatprep.subr.bf16.mxu1 %v7466_v44 }
 0x58a   : > { %6907 = vmatpush3.bf16.xpose.msra.mxu1 %v9094_v23 }
 0x58b   : > { %6908 = vmatprep.subr.bf16.mxu1 %v7466_v44 }
 0x592   : > { %6910 = vmatpush3.bf16.xpose.msra.mxu1 %v9100_v54 }
 0x593   : > { %6911 = vmatprep.subr.bf16.mxu1 %v7466_v44 }
 0x59a   : > { %6913 = vmatpush3.bf16.xpose.msra.mxu1 %v9106_v17 }
 0x59b   : > { %6914 = vmatprep.subr.bf16.mxu1 %v7466_v44 }
 0x5a2   : > { %6916 = vmatpush3.bf16.xpose.msra.mxu1 %v9112_v48 }
 0x5a3   : > { %6917 = vmatprep.subr.bf16.mxu1 %v7466_v44 }
 0x5aa   : > { %6919 = vmatpush3.bf16.xpose.msra.mxu1 %v9114_v4 }
 0x5ab   : > { %6920 = vmatprep.subr.bf16.mxu1 %v7466_v44 }
 0x5b2   : > { %6922 = vmatpush3.bf16.xpose.msra.mxu1 %v9116_v10 }
 0x5b3   : > { %6923 = vmatprep.subr.bf16.mxu1 %v7466_v44 }
 0x5ba   : > { %6925 = vmatpush3.bf16.xpose.msra.mxu1 %v9118_v60 }
 0x5bb   : > { %6926 = vmatprep.subr.bf16.mxu1 %v7466_v44 }
 0x5c1   : > { %6529 = vmatmul.mubr.f32.vlgmr.msra.gmra.mrb[16].mxu1 %v9133_v36 }
 0x5c2   : > { %6928 = vmatpush3.bf16.xpose.msra.mxu1 %v8924_v9  ;;  %6563 = vmatprep.mubr.msk.f32.mxu1 %vm7467_vm2, %v7468_v39  ;;  %v4307_v39 = vlaneseq }
 0x5c3   : > { %6929 = vmatprep.subr.bf16.mxu1 %v7466_v44 }
 0x5c4   : > { %v4308_v9 = vshrl.u32 %v4307_v39, 7 }
 0x5ca   : > { %6931 = vmatpush3.bf16.xpose.msra.mxu1 %v8943_v1  ;;  %v4309_v1 = vsub.s32 0, %v4308_v9 }
 0x5cb   : > { %6932 = vmatprep.subr.bf16.mxu1 %v7466_v44 }
 0x5cc   : > { %v4449_v58 = vpop.f32.mrb[48].mxu0 }
 0x5cd   : > { %v6390_v6 = vpop.f32.mrb[49].mxu0 }
 0x5d2   : > { %6934 = vmatpush3.bf16.xpose.msra.mxu1 %v8961_v8  ;;  %v4305_v8 = vpop.permute.xlu0 %4304 }
 0x5d3   : > { %6935 = vmatprep.subr.bf16.mxu1 %v7466_v44 }
 0x5da   : > { %6937 = vmatpush3.bf16.xpose.msra.mxu1 %v8984_v14  ;;  %v4310_v14 = vrot.slane %v4305_v8, %v4309_v1 }
 0x5db   : > { %6938 = vmatprep.subr.bf16.mxu1 %v7466_v44 }
 0x5e2   : > { %6940 = vmatpush3.bf16.xpose.msra.mxu1 %v9003_v46  ;;  %v4450_v46 = vadd.f32 %v4449_v58, %v4310_v14 }
 0x5e3   : > { %6941 = vmatprep.subr.bf16.mxu1 %v7466_v44 }
 0x5ea   : > { %6943 = vmatpush3.bf16.xpose.msra.mxu1 %v9021_v41 }
 0x5eb   : > { %6944 = vmatprep.subr.bf16.mxu1 %v7466_v44 }
 0x5f2   : > { %6946 = vmatpush3.bf16.xpose.msra.mxu1 %v9042_v45 }
 0x5f3   : > { %6947 = vmatprep.subr.bf16.mxu1 %v7466_v44 }
 0x5fa   : > { %6949 = vmatpush3.bf16.xpose.msra.mxu1 %v9055_v18 }
 0x601   : > { %6564 = vmatmul.mubr.f32.vlgmr.msra.gmra.mrb[16].mxu1 %v9133_v36 }
 0x6d4   : > { %v4999_v30 = vpop.f32.mrb[16].mxu1 }
 0x6d5   : > { %v7015_v41 = vadd.f32 %v4999_v30, %v4450_v46  ;;  %v6565_v13 = vpop.f32.mrb[17].mxu1 }
 0x6d7   : > { %5003 = vst [vmem:[%s470_s22] sm:$0x1] %v7015_v41 }
 0x6d8   : > { %7412 = shalt.err (!%p7409_p2)
}
 0x6d9   : > { %s7413_s15 = scalar_lea.hbm %s9212_s14, 16  ;;  %s7417_s22 = scalar_lea.hbm %s9264_s10, 48 }
 0x6da   : > { %p7414_p3 = scmp.ne.s32.totalorder %s9212_s14, %s7413_s15  ;;  %p7418_p6 = scmp.lt.u32.totalorder %s9212_s14, %s9264_s10 }
 0x6db   : > { %p7419_p7 = scmp.lt.u32.totalorder %s7417_s22, %s7413_s15  ;;  %p7421_p11 = scmp.lt.u32.totalorder %s7413_s15, %s9212_s14 }
 0x6dc   : > { %p7415_p4 = pnand %p7414_p3, %p7576_p8 }
 0x6dd   : > { %p7420_p10 = por %p7419_p7, %p7418_p6 }
 0x6de   : > { %p7416_p5 = pneg %p7415_p4 }
 0x6df   : > { %p7422_p12 = por %p7421_p11, %p7420_p10 }
 0x6e1   : > { %p7423_p13 = pnand %p7422_p12, %p7416_p5 }
 0x6e3   : > { %7426 = shalt.err (!%p7423_p13)
}
 0x6e4   : > { %7248 = dma.vmem_to_hbm [thread:$0]  (%p7576_p8), %s9214_s27, 16, %s9212_s14, %s5005_s16  }
 0x6e5 PF: > { %p7254_p0 = scmp.ge.s32.totalorder %s7463_s26, 2  ;;  %s5029_s17 = sand.u32 1, %s7451_s23  }
 0x6e6   : > { %s5030_s18 = scalar_lea.sflag [#allocation5], %s5029_s17 }
 0x6e7   : > { %p7251_p1 = pnand %p7254_p0, %p7580_p9 }
 0x6e9   : > { %7446 = dma.done.wait (!%p7251_p1), %s5030_s18, 16  }
 0x6ea   : > { %7448 = vsyncadd (!%p7251_p1), %s5030_s18, 4294967280  ;;  %p24_p2 = scmp.ge.s32.totalorder %s7563_s28, 5   ;;  %s9414_s23 = smov %s7455_s24 }
 0x6eb   : > { %s9415_s24 = smov %s7459_s25  ;;  %s9416_s25 = smov %s7574_s11 }
 0x6ec   : > { %s9417_s26 = smov %s7563_s28  ;;  %26 = sbr.rel (!%p24_p2) target bundleno = 15 (0xf), region = 115 }
 0x6f3   :  { %5034 = vsyncpa [#allocation5], 1 }
 0x6f4   :  { %5036 = vsyncpa [#allocation5 + $0x1], 1 }

</bundles_post_ra>
